<compile_context>
chip_gen: v5e
topology: v5e:2x2
jax: 0.10.0
libtpu: 0.0.40
codegen_flags: <defaults>
</compile_context>

<pallas_src>
import functools

import jax
import jax.numpy as jnp
from jax.experimental import pallas as pl
from jax.experimental.pallas import tpu as pltpu

EPS = 1e-5

# 2048 x 128 x f32 tile = 1 MiB; x/out double-buffers + ~4 f32 temporaries stay
# ~10 MiB at this cap -> safe under v5e (16 MiB default, raised to 32 below),
# v6e (32 MiB default) and v7x (32 MiB default / 64 MiB physical) scoped VMEM.
_MAX_BLOCK_M = 2048
_VMEM_LIMIT_BYTES = 32 * 1024 * 1024


def _round_up(n, m):
    return ((n + m - 1) // m) * m


def _tensorcores_per_chip():
    """TensorCores a "parallel" grid axis can shard across on one device."""
    try:
        kind = jax.devices()[0].device_kind.lower()
    except Exception:  # pragma: no cover - defensive; perf heuristic only
        return 1
    # v7x exposes 2 TensorCores per chip. (v4/v5p megacore would also benefit,
    # but they are not perf targets here; default to 1 for everything else.)
    if "v7" in kind:
        return 2
    return 1


def _choose_block_m(n_rows, n_cores):
    """Row-tile heuristic: as large as possible (cap _MAX_BLOCK_M); the whole
    batch in one grid step on single-TC chips; >= one tile per core on v7x."""
    n8 = _round_up(max(n_rows, 1), 8)              # sublane-aligned row count
    if n_cores > 1:
        per_core = _round_up(-(-n8 // n_cores), 8)  # ceil-div, re-aligned to 8
        return max(8, min(per_core, _MAX_BLOCK_M))
    return max(8, min(n8, _MAX_BLOCK_M))


def _residual_kernel(x_ref, vec_ref, w1_ref, w2_ref, o_ref):
    """One (TM, D) row tile of the fused residual block.

    x_ref  : (TM, D) input tile (also the residual source)
    vec_ref: (4, D) f32, rows = [s1, c1, c2, b2]
             s1/c1 = folded BN1 scale/bias; c2 = folded BN2 bias (fc1 bias
             included); b2 = fc2 bias.  BN2's scale is folded into w1's columns.
    w1_ref : (D, D) bf16  = fc1 weight^T with BN2 scale folded into columns
    w2_ref : (D, D) bf16  = fc2 weight^T
    """
    x = x_ref[...].astype(jnp.float32)
    vec = vec_ref[...]                                        # (4, D) f32
    s1, c1, c2, b2 = vec[0:1, :], vec[1:2, :], vec[2:3, :], vec[3:4, :]

    # BN1 (folded affine) + Dropout(identity) + ReLU           (f32, VPU)
    h1 = jnp.maximum(x * s1 + c1, 0.0)

    # fc1 on the MXU (BN2 scale pre-folded into columns): bf16 in, f32 acc
    y1 = jnp.dot(h1.astype(jnp.bfloat16), w1_ref[...],
                 preferred_element_type=jnp.float32)

    # BN2 (folded bias, incl. fc1 bias) + Dropout(identity) + ReLU
    h2 = jnp.maximum(y1 + c2, 0.0)

    # fc2 on the MXU: bf16 in, f32 acc
    y2 = jnp.dot(h2.astype(jnp.bfloat16), w2_ref[...],
                 preferred_element_type=jnp.float32)

    # fc2 bias + residual add with the ORIGINAL input (re-read from x_ref)
    o_ref[...] = (y2 + b2 + x).astype(o_ref.dtype)


def fold_params(params):
    """Fold eval-mode BatchNorms and Linear layouts into kernel operands.

    Call ONCE per set of weights and reuse across forward calls (hoists the
    transpose / bf16 cast / BN arithmetic out of the per-call path).
    Returns (vec, w1_folded, w2_t).
    """
    (g1, be1, m1, v1, w1, fb1, g2, be2, m2, v2, w2, fb2) = params
    dout, din = w1.shape
    assert din == dout, "downsample=None requires in_sz == out_sz"

    s1 = g1 / jnp.sqrt(v1 + EPS)                   # BN1 scale
    c1 = be1 - m1 * s1                             # BN1 bias
    s2 = g2 / jnp.sqrt(v2 + EPS)                   # BN2 scale
    c2 = (fb1 - m2) * s2 + be2                     # BN2 bias with fc1 bias folded

    # PyTorch Linear weight is (out, in); kernel wants (in, out).  Fold s2 into
    # W1's output columns BEFORE the bf16 cast (one fewer VPU mul per element).
    w1_folded = (jnp.transpose(w1) * s2[None, :]).astype(jnp.bfloat16)  # (Din, Dout)
    w2_t = jnp.transpose(w2).astype(jnp.bfloat16)                       # (Dout, Dout)

    vec = jnp.stack([s1, c1, c2, fb2], axis=0).astype(jnp.float32)      # (4, D)
    return vec, w1_folded, w2_t


@functools.partial(jax.jit, static_argnames=("block_m",))
def residual_forward_folded(x, vec, w1_folded, w2_t, block_m=None):
    """Fused forward pass given pre-folded operands (see fold_params)."""
    n, d = x.shape
    assert vec.shape == (4, d)
    assert w1_folded.shape == (d, d) and w2_t.shape == (d, d)

    tm = block_m if block_m is not None else _choose_block_m(
        n, _tensorcores_per_chip())
    n_pad = _round_up(n, tm)
    x_in = x if n_pad == n else jnp.pad(x, ((0, n_pad - n), (0, 0)))

    # Grid-invariant operands: constant index_map -> DMA'd once across the grid.
    invariant = lambda shape: pl.BlockSpec(shape, lambda i: (0,) * len(shape))

    out = pl.pallas_call(
        _residual_kernel,
        out_shape=jax.ShapeDtypeStruct((n_pad, d), x.dtype),
        grid_spec=pltpu.PrefetchScalarGridSpec(
            num_scalar_prefetch=0,
            grid=(n_pad // tm,),
            in_specs=[
                pl.BlockSpec((tm, d), lambda i: (i, 0)),   # x row tile (streamed)
                invariant((4, d)),                         # packed s1/c1/c2/b2
                invariant((d, d)),                         # w1 (bf16, s2 folded)
                invariant((d, d)),                         # w2 (bf16)
            ],
            out_specs=pl.BlockSpec((tm, d), lambda i: (i, 0)),
        ),
        compiler_params=pltpu.CompilerParams(
            dimension_semantics=("parallel",),             # shard tiles across TCs (v7x)
            vmem_limit_bytes=_VMEM_LIMIT_BYTES,            # raise v5e's 16 MiB default
        ),
    )(x_in, vec, w1_folded, w2_t)

    return out[:n]


def residual_layer_1d_v3(x, params, block_m=None):
    """Convenience wrapper: fold raw module params per call, then run kernel."""
    vec, w1_folded, w2_t = fold_params(params)
    return residual_forward_folded(x, vec, w1_folded, w2_t, block_m=block_m)


# ---------------------------------------------------------------------------
# Pure-JAX reference (mirrors the PyTorch forward exactly, eval mode).
# ---------------------------------------------------------------------------
def reference_forward(x, params):
    (g1, be1, m1, v1, w1, fb1, g2, be2, m2, v2, w2, fb2) = params

    def bn(h, g, b, m, v):
        return (h - m) * (g / jnp.sqrt(v + EPS)) + b

    s = x
    h = bn(x, g1, be1, m1, v1)
    h = jax.nn.relu(h)                     # dropout (eval) = identity
    h = h @ w1.T + fb1
    h = bn(h, g2, be2, m2, v2)
    h = jax.nn.relu(h)                     # dropout (eval) = identity
    h = h @ w2.T + fb2
    return h + s


def make_params(key, in_sz, out_sz):
    ks = jax.random.split(key, 12)
    g1 = jax.random.uniform(ks[0], (in_sz,), jnp.float32, 0.5, 1.5)
    be1 = 0.1 * jax.random.normal(ks[1], (in_sz,), jnp.float32)
    m1 = 0.1 * jax.random.normal(ks[2], (in_sz,), jnp.float32)
    v1 = jax.random.uniform(ks[3], (in_sz,), jnp.float32, 0.5, 1.5)
    w1 = jax.random.normal(ks[4], (out_sz, in_sz), jnp.float32) / jnp.sqrt(in_sz)
    fb1 = 0.1 * jax.random.normal(ks[5], (out_sz,), jnp.float32)
    g2 = jax.random.uniform(ks[6], (out_sz,), jnp.float32, 0.5, 1.5)
    be2 = 0.1 * jax.random.normal(ks[7], (out_sz,), jnp.float32)
    m2 = 0.1 * jax.random.normal(ks[8], (out_sz,), jnp.float32)
    v2 = jax.random.uniform(ks[9], (out_sz,), jnp.float32, 0.5, 1.5)
    w2 = jax.random.normal(ks[10], (out_sz, out_sz), jnp.float32) / jnp.sqrt(out_sz)
    fb2 = 0.1 * jax.random.normal(ks[11], (out_sz,), jnp.float32)
    return (g1, be1, m1, v1, w1, fb1, g2, be2, m2, v2, w2, fb2)


if __name__ == "__main__":
    N, D = 512, 128                 # downsample=None => in_sz == out_sz == D

    key = jax.random.PRNGKey(0)
    kx, kp = jax.random.split(key)
    x = jax.random.normal(kx, (N, D), jnp.float32)
    params = make_params(kp, D, D)

    out = jax.block_until_ready(residual_layer_1d_v3(x, params))
    ref = jax.block_until_ready(reference_forward(x, params))
    assert out.shape == ref.shape == (N, D)

    # bf16 MXU operands (f32 accumulation) => relative-error check vs. f32 ref.
    abs_err = jnp.max(jnp.abs(out - ref))
    rel_err = abs_err / jnp.maximum(jnp.max(jnp.abs(ref)), 1.0)
    assert float(rel_err) < 3e-2, f"mismatch vs reference: rel_err={float(rel_err)}"

    print("KERNEL_OK")
</pallas_src>

<mosaic_0001>
module attributes {stable_mosaic.version = 11 : i64} {
  func.func @_residual_kernel(%arg0: i32, %arg1: memref<512x128xf32, #tpu.memory_space<vmem>>, %arg2: memref<4x128xf32, #tpu.memory_space<vmem>>, %arg3: memref<128x128xbf16, #tpu.memory_space<vmem>>, %arg4: memref<128x128xbf16, #tpu.memory_space<vmem>>, %arg5: memref<512x128xf32, #tpu.memory_space<vmem>>) attributes {dimension_semantics = [#tpu.dimension_semantics<parallel>], iteration_bounds = array<i64: 1>, scalar_prefetch = 0 : i64, scratch_operands = 0 : i64, tpu.core_type = #tpu.core_type<tc>, window_params = [{transform_indices = @transform_0, window_bounds = array<i64: 512, 128>}, {pipeline_mode = #tpu.pipeline_mode<synchronous>, transform_indices = @transform_1, window_bounds = array<i64: 4, 128>}, {pipeline_mode = #tpu.pipeline_mode<synchronous>, transform_indices = @transform_2, window_bounds = array<i64: 128, 128>}, {pipeline_mode = #tpu.pipeline_mode<synchronous>, transform_indices = @transform_3, window_bounds = array<i64: 128, 128>}, {transform_indices = @transform_4, window_bounds = array<i64: 512, 128>}]} {
    %c0 = arith.constant 0 : index
    %c0_0 = arith.constant 0 : index
    %0 = vector.load %arg1[%c0, %c0_0] : memref<512x128xf32, #tpu.memory_space<vmem>>, vector<512x128xf32>
    %c0_1 = arith.constant 0 : index
    %c0_2 = arith.constant 0 : index
    %1 = vector.load %arg2[%c0_1, %c0_2] : memref<4x128xf32, #tpu.memory_space<vmem>>, vector<4x128xf32>
    %2 = vector.extract_strided_slice %1 {offsets = [0, 0], sizes = [1, 128], strides = [1, 1]} : vector<4x128xf32> to vector<1x128xf32>
    %3 = vector.extract_strided_slice %1 {offsets = [1, 0], sizes = [1, 128], strides = [1, 1]} : vector<4x128xf32> to vector<1x128xf32>
    %4 = vector.extract_strided_slice %1 {offsets = [2, 0], sizes = [1, 128], strides = [1, 1]} : vector<4x128xf32> to vector<1x128xf32>
    %5 = vector.extract_strided_slice %1 {offsets = [3, 0], sizes = [1, 128], strides = [1, 1]} : vector<4x128xf32> to vector<1x128xf32>
    %6 = vector.broadcast %2 : vector<1x128xf32> to vector<512x128xf32>
    %7 = arith.mulf %0, %6 : vector<512x128xf32>
    %8 = vector.broadcast %3 : vector<1x128xf32> to vector<512x128xf32>
    %9 = arith.addf %7, %8 : vector<512x128xf32>
    %cst = arith.constant 0.000000e+00 : f32
    %10 = vector.broadcast %cst : f32 to vector<512x128xf32>
    %11 = arith.maximumf %9, %10 : vector<512x128xf32>
    %12 = arith.truncf %11 : vector<512x128xf32> to vector<512x128xbf16>
    %c0_3 = arith.constant 0 : index
    %c0_4 = arith.constant 0 : index
    %13 = vector.load %arg3[%c0_3, %c0_4] : memref<128x128xbf16, #tpu.memory_space<vmem>>, vector<128x128xbf16>
    %cst_5 = arith.constant dense<0.000000e+00> : vector<512x128xf32>
    %14 = tpu.matmul %12, %13, %cst_5 {dimension_numbers = #tpu.dot_dimension_numbers<[1], [0], [0], [1], [0, 0, 1, 1], [], []>} : vector<512x128xbf16>, vector<128x128xbf16>, vector<512x128xf32> -> vector<512x128xf32>
    %15 = vector.broadcast %4 : vector<1x128xf32> to vector<512x128xf32>
    %16 = arith.addf %14, %15 : vector<512x128xf32>
    %cst_6 = arith.constant 0.000000e+00 : f32
    %17 = vector.broadcast %cst_6 : f32 to vector<512x128xf32>
    %18 = arith.maximumf %16, %17 : vector<512x128xf32>
    %19 = arith.truncf %18 : vector<512x128xf32> to vector<512x128xbf16>
    %c0_7 = arith.constant 0 : index
    %c0_8 = arith.constant 0 : index
    %20 = vector.load %arg4[%c0_7, %c0_8] : memref<128x128xbf16, #tpu.memory_space<vmem>>, vector<128x128xbf16>
    %cst_9 = arith.constant dense<0.000000e+00> : vector<512x128xf32>
    %21 = tpu.matmul %19, %20, %cst_9 {dimension_numbers = #tpu.dot_dimension_numbers<[1], [0], [0], [1], [0, 0, 1, 1], [], []>} : vector<512x128xbf16>, vector<128x128xbf16>, vector<512x128xf32> -> vector<512x128xf32>
    %22 = vector.broadcast %5 : vector<1x128xf32> to vector<512x128xf32>
    %23 = arith.addf %21, %22 : vector<512x128xf32>
    %24 = arith.addf %23, %0 : vector<512x128xf32>
    %c0_10 = arith.constant 0 : index
    %c0_11 = arith.constant 0 : index
    %25 = vector.load %arg5[%c0_10, %c0_11] : memref<512x128xf32, #tpu.memory_space<vmem>>, vector<512x128xf32>
    tpu.vector_store %arg5[%c0_10, %c0_11], %24 {strides = array<i32>} : memref<512x128xf32, #tpu.memory_space<vmem>>, vector<512x128xf32>,
    return
  }
  func.func @transform_0(%arg0: i32) -> (i32, i32) {
    %c0_i32 = arith.constant 0 : i32
    %c0_i32_0 = arith.constant 0 : i32
    return %arg0, %c0_i32 : i32, i32
  }
  func.func @transform_1(%arg0: i32) -> (i32, i32) {
    %c0_i32 = arith.constant 0 : i32
    %c0_i32_0 = arith.constant 0 : i32
    %c0_i32_1 = arith.constant 0 : i32
    return %c0_i32, %c0_i32_0 : i32, i32
  }
  func.func @transform_2(%arg0: i32) -> (i32, i32) {
    %c0_i32 = arith.constant 0 : i32
    %c0_i32_0 = arith.constant 0 : i32
    %c0_i32_1 = arith.constant 0 : i32
    return %c0_i32, %c0_i32_0 : i32, i32
  }
  func.func @transform_3(%arg0: i32) -> (i32, i32) {
    %c0_i32 = arith.constant 0 : i32
    %c0_i32_0 = arith.constant 0 : i32
    %c0_i32_1 = arith.constant 0 : i32
    return %c0_i32, %c0_i32_0 : i32, i32
  }
  func.func @transform_4(%arg0: i32) -> (i32, i32) {
    %c0_i32 = arith.constant 0 : i32
    %c0_i32_0 = arith.constant 0 : i32
    return %arg0, %c0_i32 : i32, i32
  }
}

</mosaic_0001>

<bundles_post_ra>
// kernel: residual_forward_folded.1
= control target key start
LH: loop header
LB: loop body
LE: loop exit
PB: predicated region body
PF: predicated region fallthrough
CT: control target
= control target key end

     0   :  { %9 = vsyncpa [#allocation3], 0  ;;  %s1768_s0 = inlined_call_operand.hbm [shape: f32[512,128], index: 0, kind: input, shape index: {}]   ;;  %s1769_s1 = inlined_call_operand.hbm [shape: f32[4,128], index: 1, kind: input, shape index: {}]   ;;  %s1770_s2 = inlined_call_operand.hbm [shape: bf16[128,128], index: 2, kind: input, shape index: {}]   ;;  %s1771_s3 = inlined_call_operand.hbm [shape: bf16[128,128], index: 3, kind: input, shape index: {}]   ;;  %s1772_s4 = inlined_call_operand.hbm [shape: f32[512,128], index: 4, kind: output, shape index: {}]  }
   0x1   :  { %10 = vsyncpa [#allocation6], 0 }
   0x2   :  { %11 = vsyncpa [#allocation9], 0  ;;  %s31_s17 = sshll.u32 %s1769_s1, 4  ;;  %s32_s17 = int_to_ptr.hbm [resolvable:$true] %s31_s17 }
   0x3   :  { %12 = vsyncpa [#allocation4], 0  ;;  %s1359_s18 = smov [#allocation5]   ;;  %s17_s22 = sshll.u32 %s1768_s0, 4  ;;  %s18_s22 = int_to_ptr.hbm [resolvable:$true] %s17_s22 }
   0x4   :  { %s33_s19 = sshll.u32 %s1359_s18, 4  ;;  %s1360_s23 = smov [#allocation2]   ;;  %s34_s19 = int_to_ptr.vmem [resolvable:$true] %s33_s19 }
   0x5   :  { %36 = dma.hbm_to_vmem [thread:$0]  %s32_s17, 64, %s34_s19, [#allocation6]  }
   0x6   :  { %s19_s24 = sshll.u32 %s1360_s23, 4  ;;  %s1361_s25 = smov 128   ;;  %s20_s24 = int_to_ptr.vmem [resolvable:$true] %s19_s24 }
   0x7   :  { %s1362_s26 = smov 8   ;;  %s41_s28 = sshll.u32 %s1770_s2, 4  ;;  %s42_s28 = int_to_ptr.hbm [resolvable:$true] %s41_s28 }
   0x8   :  { %25 = dma.hbm_to_vmem [thread:$0]  %s18_s22, 8192, %s20_s24, [#allocation3], %s1361_s25, %s1361_s25, %s1362_s26  }
   0x9   :  { %s1363_s29 = smov [#allocation7]   ;;  %s54_s6 = sshll.u32 %s1771_s3, 4  ;;  %s55_s6 = int_to_ptr.hbm [resolvable:$true] %s54_s6 }
   0xa   :  { %s43_s30 = sshll.u32 %s1363_s29, 4  ;;  %s1364_s7 = smov 64   ;;  %s44_s30 = int_to_ptr.vmem [resolvable:$true] %s43_s30 }
   0xb   :  { %s1365_s8 = smov 4   ;;  %s1366_s9 = smov [#allocation8]  }
   0xc   :  { %49 = dma.hbm_to_vmem [thread:$0]  %s42_s28, 1024, %s44_s30, [#allocation6], %s1364_s7, %s1364_s7, %s1365_s8  }
   0xd   :  { %s56_s10 = sshll.u32 %s1366_s9, 4  ;;  %s57_s10 = int_to_ptr.vmem [resolvable:$true] %s56_s10 }
   0xe   :  { %62 = dma.hbm_to_vmem [thread:$0]  %s55_s6, 1024, %s57_s10, [#allocation9], %s1364_s7, %s1364_s7, %s1365_s8  }
   0xf   :  { %1351 = dma.done.wait [#allocation3], 8192  }
  0x10   :  { %1352 = vsyncadd [#allocation3], 4294959104 }
  0x11   :  { %1353 = dma.done.wait [#allocation6], 1088  }
  0x12   :  { %1354 = vsyncadd [#allocation6], 4294966208 }
  0x13   :  { %1355 = dma.done.wait [#allocation9], 1024  }
  0x14   :  { %1356 = vsyncadd [#allocation9], 4294966272  ;;  %v1154_v0 = vld [vmem:[#allocation7 + $0x38] sm:$0xff]  ;;  %v1153_v1 = vld [vmem:[#allocation7 + $0x30] sm:$0xff]  ;;  %s1367_s2 = smov [#allocation10]   ;;  %s1068_s13 = sshll.u32 %s1772_s4, 4  ;;  %s1069_s13 = int_to_ptr.hbm [resolvable:$true] %s1068_s13 }
  0x15   :  { %435 = vmatpush.bf16.msra.mxu0 %v1154_v0  ;;  %1163 = vmatpush.bf16.msra.mxu2 %v1154_v0  ;;  %v1152_v2 = vld [vmem:[#allocation7 + $0x28] sm:$0xff]  ;;  %v1151_v3 = vld [vmem:[#allocation7 + $0x20] sm:$0xff]  ;;  %v1408_v4 = vld [vmem:[#allocation5] sm:$0xf]  ;;  %s1066_s3 = sshll.u32 %s1367_s2, 4  ;;  %s1067_s3 = int_to_ptr.vmem [resolvable:$true] %s1066_s3 }
  0x16   :  { %v1150_v5 = vld [vmem:[#allocation7 + $0x18] sm:$0xff]  ;;  %v1413_v7 = vperm.slane %v1408_v4, 0  ;;  %v1415_v8 = vld [vmem:[#allocation2 + $0x8] sm:$0xff]  ;;  %v1418_v11 = vperm.slane %v1408_v4, 1  ;;  %v1149_v16 = vld [vmem:[#allocation7 + $0x10] sm:$0xff] }
  0x17   :  { %v1410_v6 = vld [vmem:[#allocation2] sm:$0xff]  ;;  %v112_v10 = vld [vmem:[#allocation2 + $0x108] sm:$0xff]  ;;  %v1430_v29 = vld [vmem:[#allocation2 + $0x10] sm:$0xff] }
  0x18   :  { %v111_v9 = vld [vmem:[#allocation2 + $0x100] sm:$0xff]  ;;  %v145_v12 = vmul.f32 %v1413_v7, %v1410_v6  ;;  %v146_v13 = vmul.f32 %v1413_v7, %v1415_v8  ;;  %v178_v15 = vmul.f32 %v1413_v7, %v112_v10  ;;  %v1148_v21 = vld [vmem:[#allocation7 + $0x8] sm:$0xff]  ;;  %v82_v30 = vld [vmem:[#allocation2 + $0x18] sm:$0xff]  ;;  %v147_v33 = vmul.f32 %v1413_v7, %v1430_v29 }
  0x19   :  { %436 = vmatpush.bf16.msra.mxu0 %v1153_v1  ;;  %1164 = vmatpush.bf16.msra.mxu2 %v1153_v1  ;;  %v177_v14 = vmul.f32 %v1413_v7, %v111_v9  ;;  %v1147_v26 = vld [vmem:[#allocation7] sm:$0xff]  ;;  %v113_v31 = vld [vmem:[#allocation2 + $0x110] sm:$0xff]  ;;  %v114_v32 = vld [vmem:[#allocation2 + $0x118] sm:$0xff]  ;;  %v148_v34 = vmul.f32 %v1413_v7, %v82_v30 }
  0x1a   :  { %v210_v17 = vadd.f32 %v1418_v11, %v145_v12  ;;  %v211_v18 = vadd.f32 %v1418_v11, %v146_v13  ;;  %v243_v20 = vadd.f32 %v1418_v11, %v178_v15  ;;  %v179_v35 = vmul.f32 %v1413_v7, %v113_v31  ;;  %v1441_v47 = vld [vmem:[#allocation2 + $0x20] sm:$0xff]  ;;  %v84_v48 = vld [vmem:[#allocation2 + $0x28] sm:$0xff]  ;;  %v85_v1 = vld [vmem:[#allocation2 + $0x30] sm:$0xff] }
  0x1b   :  { %v242_v19 = vadd.f32 %v1418_v11, %v177_v14  ;;  %v180_v36 = vmul.f32 %v1413_v7, %v114_v32  ;;  %v212_v37 = vadd.f32 %v1418_v11, %v147_v33  ;;  %v213_v38 = vadd.f32 %v1418_v11, %v148_v34  ;;  %v115_v49 = vld [vmem:[#allocation2 + $0x120] sm:$0xff]  ;;  %v116_v50 = vld [vmem:[#allocation2 + $0x128] sm:$0xff] }
  0x1c   :  { %v274_v22 = vmax.f32 %v210_v17, 0.0  ;;  %v275_v23 = vmax.f32 %v211_v18, 0.0  ;;  %v307_v25 = vmax.f32 %v243_v20, 0.0  ;;  %v244_v39 = vadd.f32 %v1418_v11, %v179_v35 }
  0x1d   :  { %437 = vmatpush.bf16.msra.mxu0 %v1152_v2  ;;  %1165 = vmatpush.bf16.msra.mxu2 %v1152_v2  ;;  %v306_v24 = vmax.f32 %v242_v19, 0.0  ;;  %v245_v40 = vadd.f32 %v1418_v11, %v180_v36  ;;  %v276_v41 = vmax.f32 %v212_v37, 0.0  ;;  %v277_v42 = vmax.f32 %v213_v38, 0.0  ;;  %v86_v2 = vld [vmem:[#allocation2 + $0x38] sm:$0xff] }
  0x1e   :  { %v338_v27 = vpack.c.bf16 %v275_v23, %v274_v22  ;;  %v308_v43 = vmax.f32 %v244_v39, 0.0  ;;  %v149_v51 = vmul.f32 %v1413_v7, %v1441_v47  ;;  %v150_v52 = vmul.f32 %v1413_v7, %v84_v48 }
  0x1f   :  { %v354_v28 = vpack.c.bf16 %v307_v25, %v306_v24  ;;  %v309_v44 = vmax.f32 %v245_v40, 0.0  ;;  %v339_v45 = vpack.c.bf16 %v277_v42, %v276_v41  ;;  %v181_v53 = vmul.f32 %v1413_v7, %v115_v49  ;;  %v87_v24 = vld [vmem:[#allocation2 + $0x40] sm:$0xff]  ;;  %v88_v25 = vld [vmem:[#allocation2 + $0x48] sm:$0xff] }
  0x20   :  { %v182_v54 = vmul.f32 %v1413_v7, %v116_v50  ;;  %v214_v55 = vadd.f32 %v1418_v11, %v149_v51  ;;  %v215_v56 = vadd.f32 %v1418_v11, %v150_v52  ;;  %v151_v9 = vmul.f32 %v1413_v7, %v85_v1  ;;  %v1162_v52 = vld [vmem:[#allocation8 + $0x38] sm:$0xff] }
  0x21   :  { %438 = vmatpush.bf16.msra.mxu0 %v1151_v3  ;;  %1166 = vmatpush.bf16.msra.mxu2 %v1151_v3  ;;  %v355_v46 = vpack.c.bf16 %v309_v44, %v308_v43  ;;  %v246_v57 = vadd.f32 %v1418_v11, %v181_v53  ;;  %v117_v3 = vld [vmem:[#allocation2 + $0x130] sm:$0xff]  ;;  %v152_v10 = vmul.f32 %v1413_v7, %v86_v2  ;;  %v90_v44 = vld [vmem:[#allocation2 + $0x58] sm:$0xff]  ;;  %v123_v1 = vld [vmem:[#allocation2 + $0x160] sm:$0xff] }
  0x22   :  { %v247_v58 = vadd.f32 %v1418_v11, %v182_v54  ;;  %v278_v59 = vmax.f32 %v214_v55, 0.0  ;;  %v279_v60 = vmax.f32 %v215_v56, 0.0  ;;  %v183_v12 = vmul.f32 %v1413_v7, %v117_v3  ;;  %v89_v43 = vld [vmem:[#allocation2 + $0x50] sm:$0xff]  ;;  %765 = vmatpush.bf16.msra.mxu1 %v1162_v52  ;;  %1171 = vmatpush.bf16.msra.mxu3 %v1162_v52  ;;  %v124_v2 = vld [vmem:[#allocation2 + $0x168] sm:$0xff] }
  0x23   :  { %v310_v61 = vmax.f32 %v246_v57, 0.0  ;;  %v216_v14 = vadd.f32 %v1418_v11, %v151_v9  ;;  %v217_v15 = vadd.f32 %v1418_v11, %v152_v10  ;;  %v154_v30 = vmul.f32 %v1413_v7, %v88_v25  ;;  %v128_v52 = vld [vmem:[#allocation2 + $0x188] sm:$0xff] }
  0x24   :  { %v311_v62 = vmax.f32 %v247_v58, 0.0  ;;  %v340_v63 = vpack.c.bf16 %v279_v60, %v278_v59  ;;  %v155_v48 = vmul.f32 %v1413_v7, %v89_v43  ;;  %v156_v49 = vmul.f32 %v1413_v7, %v90_v44 }
  0x25   :  { %439 = vmatpush.bf16.msra.mxu0 %v1150_v5  ;;  %1167 = vmatpush.bf16.msra.mxu2 %v1150_v5  ;;  %v118_v5 = vld [vmem:[#allocation2 + $0x138] sm:$0xff]  ;;  %v280_v18 = vmax.f32 %v216_v14, 0.0  ;;  %v281_v19 = vmax.f32 %v217_v15, 0.0  ;;  %v219_v34 = vadd.f32 %v1418_v11, %v154_v30  ;;  %v189_v10 = vmul.f32 %v1413_v7, %v123_v1 }
  0x26   :  { %v356_v0 = vpack.c.bf16 %v311_v62, %v310_v61  ;;  %v184_v13 = vmul.f32 %v1413_v7, %v118_v5  ;;  %v220_v53 = vadd.f32 %v1418_v11, %v155_v48  ;;  %v221_v54 = vadd.f32 %v1418_v11, %v156_v49  ;;  %v1161_v5 = vld [vmem:[#allocation8 + $0x30] sm:$0xff]  ;;  %v95_v49 = vld [vmem:[#allocation2 + $0x80] sm:$0xff] }
  0x27   :  { %v341_v22 = vpack.c.bf16 %v281_v19, %v280_v18  ;;  %v283_v38 = vmax.f32 %v219_v34, 0.0  ;;  %766 = vmatpush.bf16.msra.mxu1 %v1161_v5  ;;  %1172 = vmatpush.bf16.msra.mxu3 %v1161_v5  ;;  %v1159_v18 = vld [vmem:[#allocation8 + $0x20] sm:$0xff]  ;;  %v126_v30 = vld [vmem:[#allocation2 + $0x178] sm:$0xff] }
  0x28   :  { %v249_v17 = vadd.f32 %v1418_v11, %v184_v13  ;;  %v284_v57 = vmax.f32 %v220_v53, 0.0  ;;  %v285_v58 = vmax.f32 %v221_v54, 0.0  ;;  %v1160_v13 = vld [vmem:[#allocation8 + $0x28] sm:$0xff]  ;;  %v161_v53 = vmul.f32 %v1413_v7, %v95_v49 }
  0x29   :  { %440 = vmatpush.bf16.msra.mxu0 %v1149_v16  ;;  %1168 = vmatpush.bf16.msra.mxu2 %v1149_v16  ;;  %v248_v16 = vadd.f32 %v1418_v11, %v183_v12  ;;  %v190_v12 = vmul.f32 %v1413_v7, %v124_v2 }
  0x2a   :  { %v343_v61 = vpack.c.bf16 %v285_v58, %v284_v57  ;;  %v226_v57 = vadd.f32 %v1418_v11, %v161_v53 }
  0x2b   :  { %v312_v20 = vmax.f32 %v248_v16, 0.0  ;;  %v254_v16 = vadd.f32 %v1418_v11, %v189_v10  ;;  %767 = vmatpush.bf16.msra.mxu1 %v1160_v13  ;;  %1173 = vmatpush.bf16.msra.mxu3 %v1160_v13  ;;  %v129_v10 = vld [vmem:[#allocation2 + $0x190] sm:$0xff] }
  0x2d   :  { %441 = vmatpush.bf16.msra.mxu0 %v1148_v21  ;;  %1169 = vmatpush.bf16.msra.mxu2 %v1148_v21  ;;  %v313_v21 = vmax.f32 %v249_v17, 0.0  ;;  %v255_v17 = vadd.f32 %v1418_v11, %v190_v12  ;;  %v130_v12 = vld [vmem:[#allocation2 + $0x198] sm:$0xff] }
  0x2f   :  { %v357_v23 = vpack.c.bf16 %v313_v21, %v312_v20  ;;  %v318_v21 = vmax.f32 %v254_v16, 0.0  ;;  %768 = vmatpush.bf16.msra.mxu1 %v1159_v18  ;;  %1174 = vmatpush.bf16.msra.mxu3 %v1159_v18  ;;  %v195_v16 = vmul.f32 %v1413_v7, %v129_v10 }
  0x31   :  { %442 = vmatpush.bf16.msra.mxu0 %v1147_v26  ;;  %1170 = vmatpush.bf16.msra.mxu2 %v1147_v26  ;;  %v119_v26 = vld [vmem:[#allocation2 + $0x140] sm:$0xff] }
  0x32   :  { %v185_v31 = vmul.f32 %v1413_v7, %v119_v26  ;;  %v93_v26 = vld [vmem:[#allocation2 + $0x70] sm:$0xff] }
  0x34   :  { %443 = vmatmul.bf16.vlgmr.msra.gmra.mxu0 %v338_v27  ;;  %523 = vmatmul.bf16.vlgmr.msra.gmra.mxu2 %v354_v28  ;;  %v120_v27 = vld [vmem:[#allocation2 + $0x148] sm:$0xff]  ;;  %v153_v28 = vmul.f32 %v1413_v7, %v87_v24  ;;  %v250_v35 = vadd.f32 %v1418_v11, %v185_v31  ;;  %v159_v31 = vmul.f32 %v1413_v7, %v93_v26 }
  0x35   :  { %v186_v32 = vmul.f32 %v1413_v7, %v120_v27  ;;  %v94_v27 = vld [vmem:[#allocation2 + $0x78] sm:$0xff] }
  0x36   :  { %v218_v33 = vadd.f32 %v1418_v11, %v153_v28  ;;  %v314_v39 = vmax.f32 %v250_v35, 0.0  ;;  %v125_v28 = vld [vmem:[#allocation2 + $0x170] sm:$0xff]  ;;  %v192_v35 = vmul.f32 %v1413_v7, %v126_v30 }
  0x37   :  { %v251_v36 = vadd.f32 %v1418_v11, %v186_v32  ;;  %v1157_v32 = vld [vmem:[#allocation8 + $0x10] sm:$0xff]  ;;  %v191_v34 = vmul.f32 %v1413_v7, %v125_v28 }
  0x38   :  { %v282_v37 = vmax.f32 %v218_v33, 0.0  ;;  %v160_v33 = vmul.f32 %v1413_v7, %v94_v27 }
  0x39   :  { %v315_v40 = vmax.f32 %v251_v36, 0.0  ;;  %v1156_v36 = vld [vmem:[#allocation8 + $0x8] sm:$0xff] }
  0x3a   :  { %v342_v41 = vpack.c.bf16 %v283_v38, %v282_v37  ;;  %v224_v37 = vadd.f32 %v1418_v11, %v159_v31  ;;  %v225_v38 = vadd.f32 %v1418_v11, %v160_v33 }
  0x3b   :  { %v358_v42 = vpack.c.bf16 %v315_v40, %v314_v39  ;;  %v256_v39 = vadd.f32 %v1418_v11, %v191_v34  ;;  %v257_v40 = vadd.f32 %v1418_v11, %v192_v35 }
  0x3c   :  { %v289_v43 = vmax.f32 %v225_v38, 0.0 }
  0x3d   :  { %v320_v44 = vmax.f32 %v256_v39, 0.0  ;;  %v99_v39 = vld [vmem:[#allocation2 + $0xa0] sm:$0xff] }
  0x44   :  { %448 = vmatmul.bf16.gmra.mxu0 %v339_v45  ;;  %528 = vmatmul.bf16.gmra.mxu2 %v355_v46  ;;  %v121_v45 = vld [vmem:[#allocation2 + $0x150] sm:$0xff]  ;;  %v122_v46 = vld [vmem:[#allocation2 + $0x158] sm:$0xff] }
  0x45   :  { %v187_v50 = vmul.f32 %v1413_v7, %v121_v45  ;;  %v188_v51 = vmul.f32 %v1413_v7, %v122_v46  ;;  %v321_v45 = vmax.f32 %v257_v40, 0.0  ;;  %v100_v40 = vld [vmem:[#allocation2 + $0xa8] sm:$0xff] }
  0x47   :  { %v252_v55 = vadd.f32 %v1418_v11, %v187_v50  ;;  %v253_v56 = vadd.f32 %v1418_v11, %v188_v51  ;;  %v361_v48 = vpack.c.bf16 %v321_v45, %v320_v44  ;;  %v96_v50 = vld [vmem:[#allocation2 + $0x88] sm:$0xff]  ;;  %v127_v51 = vld [vmem:[#allocation2 + $0x180] sm:$0xff] }
  0x48   :  { %v162_v54 = vmul.f32 %v1413_v7, %v96_v50 }
  0x49   :  { %v316_v59 = vmax.f32 %v252_v55, 0.0  ;;  %v317_v60 = vmax.f32 %v253_v56, 0.0  ;;  %v193_v55 = vmul.f32 %v1413_v7, %v127_v51  ;;  %v194_v56 = vmul.f32 %v1413_v7, %v128_v52 }
  0x4a   :  { %v227_v58 = vadd.f32 %v1418_v11, %v162_v54 }
  0x4b   :  { %v359_v62 = vpack.c.bf16 %v317_v60, %v316_v59  ;;  %v258_v59 = vadd.f32 %v1418_v11, %v193_v55  ;;  %v259_v60 = vadd.f32 %v1418_v11, %v194_v56 }
  0x54   :  { %453 = vmatmul.bf16.gmra.mxu0 %v340_v63  ;;  %533 = vmatmul.bf16.gmra.mxu2 %v356_v0  ;;  %v91_v63 = vld [vmem:[#allocation2 + $0x60] sm:$0xff]  ;;  %v92_v0 = vld [vmem:[#allocation2 + $0x68] sm:$0xff] }
  0x55   :  { %v157_v3 = vmul.f32 %v1413_v7, %v91_v63  ;;  %v158_v9 = vmul.f32 %v1413_v7, %v92_v0  ;;  %v322_v63 = vmax.f32 %v258_v59, 0.0  ;;  %v323_v0 = vmax.f32 %v259_v60, 0.0 }
  0x57   :  { %v222_v14 = vadd.f32 %v1418_v11, %v157_v3  ;;  %v223_v15 = vadd.f32 %v1418_v11, %v158_v9  ;;  %v362_v2 = vpack.c.bf16 %v323_v0, %v322_v63  ;;  %v97_v3 = vld [vmem:[#allocation2 + $0x90] sm:$0xff]  ;;  %v98_v9 = vld [vmem:[#allocation2 + $0x98] sm:$0xff] }
  0x58   :  { %v163_v13 = vmul.f32 %v1413_v7, %v97_v3 }
  0x59   :  { %v286_v19 = vmax.f32 %v222_v14, 0.0  ;;  %v287_v20 = vmax.f32 %v223_v15, 0.0  ;;  %v1502_v14 = vperm.slane %v1408_v4, 2  ;;  %v164_v15 = vmul.f32 %v1413_v7, %v98_v9 }
  0x5b   :  { %v344_v24 = vpack.c.bf16 %v287_v20, %v286_v19  ;;  %v228_v20 = vadd.f32 %v1418_v11, %v163_v13  ;;  %v1527_v13 = vld [vmem:[#allocation2 + $0xb0] sm:$0xff] }
  0x5d   :  { %v292_v27 = vmax.f32 %v228_v20, 0.0 }
  0x64   :  { %458 = vmatmul.bf16.gmra.mxu0 %v341_v22  ;;  %538 = vmatmul.bf16.gmra.mxu2 %v357_v23  ;;  %v319_v22 = vmax.f32 %v255_v17, 0.0  ;;  %v1158_v23 = vld [vmem:[#allocation8 + $0x18] sm:$0xff]  ;;  %v196_v17 = vmul.f32 %v1413_v7, %v130_v12 }
  0x65   :  { %769 = vmatpush.bf16.msra.mxu1 %v1158_v23  ;;  %1175 = vmatpush.bf16.msra.mxu3 %v1158_v23 }
  0x66   :  { %v360_v25 = vpack.c.bf16 %v319_v22, %v318_v21  ;;  %v229_v21 = vadd.f32 %v1418_v11, %v164_v15  ;;  %v260_v22 = vadd.f32 %v1418_v11, %v195_v16  ;;  %v261_v23 = vadd.f32 %v1418_v11, %v196_v17  ;;  %v102_v15 = vld [vmem:[#allocation2 + $0xb8] sm:$0xff]  ;;  %v133_v17 = vld [vmem:[#allocation2 + $0x1b0] sm:$0xff] }
  0x68   :  { %v293_v30 = vmax.f32 %v229_v21, 0.0  ;;  %v324_v31 = vmax.f32 %v260_v22, 0.0  ;;  %v167_v21 = vmul.f32 %v1413_v7, %v1527_v13  ;;  %v168_v22 = vmul.f32 %v1413_v7, %v102_v15 }
  0x69   :  { %770 = vmatpush.bf16.msra.mxu1 %v1157_v32  ;;  %1176 = vmatpush.bf16.msra.mxu3 %v1157_v32  ;;  %v325_v32 = vmax.f32 %v261_v23, 0.0 }
  0x6b   :  { %v363_v38 = vpack.c.bf16 %v325_v32, %v324_v31 }
  0x6d   :  { %771 = vmatpush.bf16.msra.mxu1 %v1156_v36  ;;  %1177 = vmatpush.bf16.msra.mxu3 %v1156_v36 }
  0x74   :  { %463 = vmatmul.bf16.gmra.mxu0 %v342_v41  ;;  %543 = vmatmul.bf16.gmra.mxu2 %v358_v42  ;;  %v1155_v41 = vld [vmem:[#allocation8] sm:$0xff]  ;;  %v288_v42 = vmax.f32 %v224_v37, 0.0  ;;  %v347_v37 = vpack.c.bf16 %v293_v30, %v292_v27  ;;  %v233_v30 = vadd.f32 %v1418_v11, %v168_v22 }
  0x75   :  { %772 = vmatpush.bf16.msra.mxu1 %v1155_v41  ;;  %1178 = vmatpush.bf16.msra.mxu3 %v1155_v41 }
  0x76   :  { %v345_v46 = vpack.c.bf16 %v289_v43, %v288_v42  ;;  %v131_v42 = vld [vmem:[#allocation2 + $0x1a0] sm:$0xff]  ;;  %v132_v43 = vld [vmem:[#allocation2 + $0x1a8] sm:$0xff] }
  0x77   :  { %v197_v50 = vmul.f32 %v1413_v7, %v131_v42  ;;  %v198_v51 = vmul.f32 %v1413_v7, %v132_v43 }
  0x79   :  { %v262_v56 = vadd.f32 %v1418_v11, %v197_v50 }
  0x7b   :  { %v326_v0 = vmax.f32 %v262_v56, 0.0 }
  0x84   :  { %468 = vmatmul.bf16.gmra.mxu0 %v343_v61  ;;  %548 = vmatmul.bf16.gmra.mxu2 %v359_v62  ;;  %v290_v61 = vmax.f32 %v226_v57, 0.0  ;;  %v291_v62 = vmax.f32 %v227_v58, 0.0  ;;  %v263_v57 = vadd.f32 %v1418_v11, %v198_v51  ;;  %v1546_v51 = vld [vmem:[#allocation2 + $0x1c0] sm:$0xff] }
  0x86   :  { %v346_v1 = vpack.c.bf16 %v291_v62, %v290_v61 }
  0x94   :  { %473 = vmatmul.bf16.gmra.mxu0 %v344_v24  ;;  %553 = vmatmul.bf16.gmra.mxu2 %v360_v25 }
  0xa4   :  { %478 = vmatmul.bf16.gmra.mxu0 %v345_v46  ;;  %558 = vmatmul.bf16.gmra.mxu2 %v361_v48  ;;  %v165_v46 = vmul.f32 %v1413_v7, %v99_v39  ;;  %v166_v48 = vmul.f32 %v1413_v7, %v100_v40 }
  0xa6   :  { %v230_v54 = vadd.f32 %v1418_v11, %v165_v46  ;;  %v231_v55 = vadd.f32 %v1418_v11, %v166_v48  ;;  %v1542_v48 = vld [vmem:[#allocation2 + $0xc0] sm:$0xff] }
  0xa8   :  { %v294_v61 = vmax.f32 %v230_v54, 0.0  ;;  %v295_v63 = vmax.f32 %v231_v55, 0.0  ;;  %v169_v55 = vmul.f32 %v1413_v7, %v1542_v48 }
  0xaa   :  { %v348_v10 = vpack.c.bf16 %v295_v63, %v294_v61 }
  0xb1   :  { %v444_v5 = vpop.f32.mrf.mxu0 }
  0xb2   :  { %v445_v18 = vadd.f32 %v444_v5, %v1502_v14 }
  0xb4   :  { %483 = vmatmul.bf16.gmra.mxu0 %v346_v1  ;;  %563 = vmatmul.bf16.gmra.mxu2 %v362_v2  ;;  %v604_v25 = vmax.f32 %v445_v18, 0.0  ;;  %v327_v1 = vmax.f32 %v263_v57, 0.0  ;;  %v134_v18 = vld [vmem:[#allocation2 + $0x1b8] sm:$0xff] }
  0xb6   :  { %v364_v12 = vpack.c.bf16 %v327_v1, %v326_v0 }
  0xb7   :  { %v524_v19 = vpop.f32.mrf.mxu2 }
  0xb8   :  { %v525_v33 = vadd.f32 %v524_v19, %v1502_v14 }
  0xb9   :  { %v446_v24 = vpop.f32.mrf.mxu0 }
  0xba   :  { %v447_v26 = vadd.f32 %v446_v24, %v1502_v14  ;;  %v636_v44 = vmax.f32 %v525_v33, 0.0  ;;  %v199_v24 = vmul.f32 %v1413_v7, %v133_v17 }
  0xbc   :  { %v605_v28 = vmax.f32 %v447_v26, 0.0  ;;  %v264_v31 = vadd.f32 %v1418_v11, %v199_v24  ;;  %v1568_v24 = vld [vmem:[#allocation2 + $0xd8] sm:$0xff] }
  0xbe   :  { %v668_v34 = vpack.c.bf16 %v605_v28, %v604_v25  ;;  %v200_v25 = vmul.f32 %v1413_v7, %v134_v18  ;;  %v232_v28 = vadd.f32 %v1418_v11, %v167_v21  ;;  %v328_v39 = vmax.f32 %v264_v31, 0.0 }
  0xbf   :  { %v526_v35 = vpop.f32.mrf.mxu2 }
  0xc0   :  { %v527_v36 = vadd.f32 %v526_v35, %v1502_v14  ;;  %773 = vmatmul.bf16.vlgmr.msra.gmra.mxu1 %v668_v34  ;;  %v265_v32 = vadd.f32 %v1418_v11, %v200_v25 }
  0xc1   :  { %v449_v41 = vpop.f32.mrf.mxu0 }
  0xc2   :  { %v637_v45 = vmax.f32 %v527_v36, 0.0  ;;  %v450_v52 = vadd.f32 %v449_v41, %v1502_v14  ;;  %v296_v36 = vmax.f32 %v232_v28, 0.0  ;;  %v329_v40 = vmax.f32 %v265_v32, 0.0 }
  0xc3   :  { %v172_v32 = vmul.f32 %v1413_v7, %v1568_v24 }
  0xc4   :  { %488 = vmatmul.bf16.gmra.mxu0 %v347_v37  ;;  %568 = vmatmul.bf16.gmra.mxu2 %v363_v38  ;;  %v684_v49 = vpack.c.bf16 %v637_v45, %v636_v44  ;;  %v606_v59 = vmax.f32 %v450_v52, 0.0  ;;  %v297_v38 = vmax.f32 %v233_v30, 0.0  ;;  %v365_v46 = vpack.c.bf16 %v329_v40, %v328_v39  ;;  %v1548_v52 = vld [vmem:[#allocation2 + $0x1c8] sm:$0xff] }
  0xc5   :  { %v237_v39 = vadd.f32 %v1418_v11, %v172_v32 }
  0xc6   :  { %853 = vmatmul.bf16.vlgmr.msra.gmra.mxu3 %v684_v49  ;;  %v349_v45 = vpack.c.bf16 %v297_v38, %v296_v36  ;;  %v1544_v49 = vld [vmem:[#allocation2 + $0xc8] sm:$0xff] }
  0xc7   :  { %v529_v53 = vpop.f32.mrf.mxu2  ;;  %v170_v56 = vmul.f32 %v1413_v7, %v1544_v49 }
  0xc8   :  { %v530_v2 = vadd.f32 %v529_v53, %v1502_v14 }
  0xc9   :  { %v451_v58 = vpop.f32.mrf.mxu0  ;;  %v235_v63 = vadd.f32 %v1418_v11, %v170_v56 }
  0xca   :  { %v452_v60 = vadd.f32 %v451_v58, %v1502_v14  ;;  %v638_v19 = vmax.f32 %v530_v2, 0.0  ;;  %v201_v58 = vmul.f32 %v1413_v7, %v1546_v51 }
  0xcc   :  { %v607_v62 = vmax.f32 %v452_v60, 0.0  ;;  %v266_v0 = vadd.f32 %v1418_v11, %v201_v58 }
  0xce   :  { %v669_v3 = vpack.c.bf16 %v607_v62, %v606_v59  ;;  %v202_v59 = vmul.f32 %v1413_v7, %v1548_v52  ;;  %v234_v62 = vadd.f32 %v1418_v11, %v169_v55  ;;  %v330_v15 = vmax.f32 %v266_v0, 0.0  ;;  %v1594_v0 = vld [vmem:[#allocation2 + $0x1e0] sm:$0xff] }
  0xcf   :  { %v531_v5 = vpop.f32.mrf.mxu2 }
  0xd0   :  { %v532_v9 = vadd.f32 %v531_v5, %v1502_v14  ;;  %778 = vmatmul.bf16.gmra.mxu1 %v669_v3  ;;  %v267_v1 = vadd.f32 %v1418_v11, %v202_v59 }
  0xd1   :  { %v454_v16 = vpop.f32.mrf.mxu0 }
  0xd2   :  { %v639_v20 = vmax.f32 %v532_v9, 0.0  ;;  %v455_v26 = vadd.f32 %v454_v16, %v1502_v14  ;;  %v298_v9 = vmax.f32 %v234_v62, 0.0  ;;  %v331_v16 = vmax.f32 %v267_v1, 0.0  ;;  %v1592_v62 = vld [vmem:[#allocation2 + $0xe8] sm:$0xff] }
  0xd3   :  { %v1596_v1 = vld [vmem:[#allocation2 + $0x1e8] sm:$0xff] }
  0xd4   :  { %493 = vmatmul.bf16.gmra.mxu0 %v348_v10  ;;  %573 = vmatmul.bf16.gmra.mxu2 %v364_v12  ;;  %v685_v23 = vpack.c.bf16 %v639_v20, %v638_v19  ;;  %v608_v34 = vmax.f32 %v455_v26, 0.0  ;;  %v299_v12 = vmax.f32 %v235_v63, 0.0  ;;  %v366_v22 = vpack.c.bf16 %v331_v16, %v330_v15  ;;  %v1570_v26 = vld [vmem:[#allocation2 + $0x1d0] sm:$0xff] }
  0xd5   :  { %v206_v15 = vmul.f32 %v1413_v7, %v1596_v1 }
  0xd6   :  { %858 = vmatmul.bf16.gmra.mxu3 %v685_v23  ;;  %v350_v21 = vpack.c.bf16 %v299_v12, %v298_v9  ;;  %v1566_v23 = vld [vmem:[#allocation2 + $0xd0] sm:$0xff]  ;;  %v174_v9 = vmul.f32 %v1413_v7, %v1592_v62  ;;  %v205_v12 = vmul.f32 %v1413_v7, %v1594_v0 }
  0xd7   :  { %v534_v27 = vpop.f32.mrf.mxu2  ;;  %v171_v31 = vmul.f32 %v1413_v7, %v1566_v23 }
  0xd8   :  { %v535_v41 = vadd.f32 %v534_v27, %v1502_v14  ;;  %v1572_v27 = vld [vmem:[#allocation2 + $0x1d8] sm:$0xff] }
  0xd9   :  { %v456_v33 = vpop.f32.mrf.mxu0  ;;  %v236_v38 = vadd.f32 %v1418_v11, %v171_v31 }
  0xda   :  { %v457_v35 = vadd.f32 %v456_v33, %v1502_v14  ;;  %v640_v53 = vmax.f32 %v535_v41, 0.0 }
  0xdc   :  { %v609_v37 = vmax.f32 %v457_v35, 0.0  ;;  %v204_v35 = vmul.f32 %v1413_v7, %v1572_v27 }
  0xde   :  { %v670_v42 = vpack.c.bf16 %v609_v37, %v608_v34  ;;  %v203_v34 = vmul.f32 %v1413_v7, %v1570_v26  ;;  %v269_v41 = vadd.f32 %v1418_v11, %v204_v35 }
  0xdf   :  { %v536_v43 = vpop.f32.mrf.mxu2 }
  0xe0   :  { %v537_v44 = vadd.f32 %v536_v43, %v1502_v14  ;;  %783 = vmatmul.bf16.gmra.mxu1 %v670_v42  ;;  %v268_v40 = vadd.f32 %v1418_v11, %v203_v34 }
  0xe1   :  { %v459_v50 = vpop.f32.mrf.mxu0 }
  0xe2   :  { %v641_v54 = vmax.f32 %v537_v44, 0.0  ;;  %v460_v60 = vadd.f32 %v459_v50, %v1502_v14  ;;  %v301_v50 = vmax.f32 %v237_v39, 0.0 }
  0xe4   :  { %498 = vmatmul.bf16.gmra.mxu0 %v349_v45  ;;  %578 = vmatmul.bf16.gmra.mxu2 %v365_v46  ;;  %v686_v57 = vpack.c.bf16 %v641_v54, %v640_v53  ;;  %v610_v3 = vmax.f32 %v460_v60, 0.0  ;;  %v300_v45 = vmax.f32 %v236_v38, 0.0  ;;  %v332_v53 = vmax.f32 %v268_v40, 0.0 }
  0xe5   :  { %v333_v54 = vmax.f32 %v269_v41, 0.0  ;;  %v1614_v41 = vld [vmem:[#allocation2 + $0xf0] sm:$0xff] }
  0xe6   :  { %863 = vmatmul.bf16.gmra.mxu3 %v686_v57  ;;  %v351_v59 = vpack.c.bf16 %v301_v50, %v300_v45  ;;  %v1620_v45 = vld [vmem:[#allocation2 + $0x1f8] sm:$0xff] }
  0xe7   :  { %v539_v61 = vpop.f32.mrf.mxu2  ;;  %v367_v60 = vpack.c.bf16 %v333_v54, %v332_v53  ;;  %v175_v53 = vmul.f32 %v1413_v7, %v1614_v41 }
  0xe8   :  { %v540_v17 = vadd.f32 %v539_v61, %v1502_v14  ;;  %v1590_v61 = vld [vmem:[#allocation2 + $0xe0] sm:$0xff] }
  0xe9   :  { %v461_v2 = vpop.f32.mrf.mxu0 }
  0xea   :  { %v462_v5 = vadd.f32 %v461_v2, %v1502_v14  ;;  %v642_v28 = vmax.f32 %v540_v17, 0.0 }
  0xec   :  { %v611_v10 = vmax.f32 %v462_v5, 0.0  ;;  %v173_v5 = vmul.f32 %v1413_v7, %v1590_v61 }
  0xee   :  { %v671_v18 = vpack.c.bf16 %v611_v10, %v610_v3 }
  0xef   :  { %v541_v19 = vpop.f32.mrf.mxu2 }
  0xf0   :  { %v542_v20 = vadd.f32 %v541_v19, %v1502_v14  ;;  %788 = vmatmul.bf16.gmra.mxu1 %v671_v18  ;;  %v238_v18 = vadd.f32 %v1418_v11, %v173_v5  ;;  %v239_v19 = vadd.f32 %v1418_v11, %v174_v9 }
  0xf1   :  { %v464_v25 = vpop.f32.mrf.mxu0 }
  0xf2   :  { %v643_v30 = vmax.f32 %v542_v20, 0.0  ;;  %v465_v36 = vadd.f32 %v464_v25, %v1502_v14  ;;  %v270_v20 = vadd.f32 %v1418_v11, %v205_v12  ;;  %v303_v32 = vmax.f32 %v239_v19, 0.0 }
  0xf4   :  { %503 = vmatmul.bf16.gmra.mxu0 %v350_v21  ;;  %583 = vmatmul.bf16.gmra.mxu2 %v366_v22  ;;  %v687_v33 = vpack.c.bf16 %v643_v30, %v642_v28  ;;  %v612_v43 = vmax.f32 %v465_v36, 0.0  ;;  %v271_v21 = vadd.f32 %v1418_v11, %v206_v15  ;;  %v302_v30 = vmax.f32 %v238_v18, 0.0 }
  0xf6   :  { %868 = vmatmul.bf16.gmra.mxu3 %v687_v33  ;;  %v334_v33 = vmax.f32 %v270_v20, 0.0  ;;  %v335_v34 = vmax.f32 %v271_v21, 0.0  ;;  %v352_v39 = vpack.c.bf16 %v303_v32, %v302_v30 }
  0xf7   :  { %v544_v37 = vpop.f32.mrf.mxu2 }
  0xf8   :  { %v545_v55 = vadd.f32 %v544_v37, %v1502_v14  ;;  %v368_v40 = vpack.c.bf16 %v335_v34, %v334_v33 }
  0xf9   :  { %v466_v42 = vpop.f32.mrf.mxu0 }
  0xfa   :  { %v467_v44 = vadd.f32 %v466_v42, %v1502_v14  ;;  %v644_v2 = vmax.f32 %v545_v55, 0.0  ;;  %v1616_v42 = vld [vmem:[#allocation2 + $0xf8] sm:$0xff] }
  0xfb   :  { %v176_v54 = vmul.f32 %v1413_v7, %v1616_v42 }
  0xfc   :  { %v613_v46 = vmax.f32 %v467_v44, 0.0  ;;  %v1618_v44 = vld [vmem:[#allocation2 + $0x1f0] sm:$0xff] }
  0xfe   :  { %v672_v56 = vpack.c.bf16 %v613_v46, %v612_v43 }
  0xff   :  { %v546_v57 = vpop.f32.mrf.mxu2 }
 0x100   :  { %v547_v58 = vadd.f32 %v546_v57, %v1502_v14  ;;  %793 = vmatmul.bf16.gmra.mxu1 %v672_v56  ;;  %v207_v56 = vmul.f32 %v1413_v7, %v1618_v44  ;;  %v208_v57 = vmul.f32 %v1413_v7, %v1620_v45 }
 0x101   :  { %v469_v63 = vpop.f32.mrf.mxu0 }
 0x102   :  { %v645_v3 = vmax.f32 %v547_v58, 0.0  ;;  %v470_v16 = vadd.f32 %v469_v63, %v1502_v14  ;;  %v241_v63 = vadd.f32 %v1418_v11, %v176_v54 }
 0x104   :  { %508 = vmatmul.bf16.gmra.mxu0 %v351_v59  ;;  %588 = vmatmul.bf16.gmra.mxu2 %v367_v60  ;;  %v688_v10 = vpack.c.bf16 %v645_v3, %v644_v2  ;;  %v614_v25 = vmax.f32 %v470_v16, 0.0  ;;  %v240_v60 = vadd.f32 %v1418_v11, %v175_v53  ;;  %v272_v2 = vadd.f32 %v1418_v11, %v207_v56 }
 0x105   :  { %v273_v3 = vadd.f32 %v1418_v11, %v208_v57  ;;  %v305_v16 = vmax.f32 %v241_v63, 0.0 }
 0x106   :  { %873 = vmatmul.bf16.gmra.mxu3 %v688_v10  ;;  %v304_v12 = vmax.f32 %v240_v60, 0.0  ;;  %v336_v7 = vmax.f32 %v272_v2, 0.0  ;;  %v1645_v60 = vperm.slane %v1408_v4, 3 }
 0x107   :  { %v549_v17 = vpop.f32.mrf.mxu2 }
 0x108   :  { %v550_v35 = vadd.f32 %v549_v17, %v1502_v14  ;;  %v337_v17 = vmax.f32 %v273_v3, 0.0 }
 0x109   :  { %v471_v22 = vpop.f32.mrf.mxu0 }
 0x10a   :  { %v472_v28 = vadd.f32 %v471_v22, %v1502_v14  ;;  %v646_v46 = vmax.f32 %v550_v35, 0.0  ;;  %v353_v22 = vpack.c.bf16 %v305_v16, %v304_v12 }
 0x10c   :  { %v615_v31 = vmax.f32 %v472_v28, 0.0 }
 0x10e   :  { %v673_v36 = vpack.c.bf16 %v615_v31, %v614_v25  ;;  %v369_v25 = vpack.c.bf16 %v337_v17, %v336_v7 }
 0x10f   :  { %v551_v37 = vpop.f32.mrf.mxu2 }
 0x110   :  { %v552_v38 = vadd.f32 %v551_v37, %v1502_v14  ;;  %798 = vmatmul.bf16.gmra.mxu1 %v673_v36 }
 0x111   :  { %v474_v43 = vpop.f32.mrf.mxu0 }
 0x112   :  { %v647_v50 = vmax.f32 %v552_v38, 0.0  ;;  %v475_v58 = vadd.f32 %v474_v43, %v1502_v14 }
 0x114   :  { %513 = vmatmul.bf16.gmra.mxu0 %v352_v39  ;;  %593 = vmatmul.bf16.gmra.mxu2 %v368_v40  ;;  %v689_v55 = vpack.c.bf16 %v647_v50, %v646_v46  ;;  %v616_v9 = vmax.f32 %v475_v58, 0.0 }
 0x116   :  { %878 = vmatmul.bf16.gmra.mxu3 %v689_v55 }
 0x117   :  { %v554_v59 = vpop.f32.mrf.mxu2 }
 0x118   :  { %v555_v18 = vadd.f32 %v554_v59, %v1502_v14 }
 0x119   :  { %v476_v5 = vpop.f32.mrf.mxu0 }
 0x11a   :  { %v477_v10 = vadd.f32 %v476_v5, %v1502_v14  ;;  %v648_v11 = vmax.f32 %v555_v18, 0.0 }
 0x11c   :  { %v617_v15 = vmax.f32 %v477_v10, 0.0 }
 0x11e   :  { %v674_v19 = vpack.c.bf16 %v617_v15, %v616_v9 }
 0x11f   :  { %v556_v20 = vpop.f32.mrf.mxu2 }
 0x120   :  { %v557_v21 = vadd.f32 %v556_v20, %v1502_v14  ;;  %803 = vmatmul.bf16.gmra.mxu1 %v674_v19 }
 0x121   :  { %v479_v28 = vpop.f32.mrf.mxu0 }
 0x122   :  { %v649_v30 = vmax.f32 %v557_v21, 0.0  ;;  %v480_v32 = vadd.f32 %v479_v28, %v1502_v14 }
 0x124   :  { %518 = vmatmul.bf16.gmra.mxu0 %v353_v22  ;;  %598 = vmatmul.bf16.gmra.mxu2 %v369_v25  ;;  %v690_v31 = vpack.c.bf16 %v649_v30, %v648_v11  ;;  %v618_v35 = vmax.f32 %v480_v32, 0.0  ;;  %v1188_v32 = vld [vmem:[#allocation2 + $0x100] sm:$0xff] }
 0x126   :  { %883 = vmatmul.bf16.gmra.mxu3 %v690_v31 }
 0x127   :  { %v559_v33 = vpop.f32.mrf.mxu2 }
 0x128   :  { %v560_v38 = vadd.f32 %v559_v33, %v1502_v14 }
 0x129   :  { %v481_v34 = vpop.f32.mrf.mxu0 }
 0x12a   :  { %v482_v36 = vadd.f32 %v481_v34, %v1502_v14  ;;  %v650_v50 = vmax.f32 %v560_v38, 0.0 }
 0x12c   :  { %v619_v37 = vmax.f32 %v482_v36, 0.0 }
 0x12e   :  { %v675_v39 = vpack.c.bf16 %v619_v37, %v618_v35 }
 0x12f   :  { %v561_v40 = vpop.f32.mrf.mxu2 }
 0x130   :  { %v562_v43 = vadd.f32 %v561_v40, %v1502_v14  ;;  %808 = vmatmul.bf16.gmra.mxu1 %v675_v39 }
 0x131   :  { %v484_v46 = vpop.f32.mrf.mxu0 }
 0x132   :  { %v651_v53 = vmax.f32 %v562_v43, 0.0  ;;  %v485_v55 = vadd.f32 %v484_v46, %v1502_v14 }
 0x134   :  { %v691_v54 = vpack.c.bf16 %v651_v53, %v650_v50  ;;  %v620_v58 = vmax.f32 %v485_v55, 0.0 }
 0x136   :  { %888 = vmatmul.bf16.gmra.mxu3 %v691_v54  ;;  %v1189_v54 = vld [vmem:[#allocation2 + $0x108] sm:$0xff] }
 0x137   :  { %v564_v56 = vpop.f32.mrf.mxu2 }
 0x138   :  { %v565_v3 = vadd.f32 %v564_v56, %v1502_v14 }
 0x139   :  { %v486_v57 = vpop.f32.mrf.mxu0 }
 0x13a   :  { %v487_v59 = vadd.f32 %v486_v57, %v1502_v14  ;;  %v652_v7 = vmax.f32 %v565_v3, 0.0 }
 0x13c   :  { %v621_v63 = vmax.f32 %v487_v59, 0.0 }
 0x13d   :  { %v774_v2 = vpop.f32.mrf.mxu1 }
 0x13e   :  { %v775_v5 = vadd.f32 %v774_v2, %v1645_v60  ;;  %v676_v9 = vpack.c.bf16 %v621_v63, %v620_v58  ;;  %v1190_v63 = vld [vmem:[#allocation2 + $0x18] sm:$0xff] }
 0x13f   :  { %v566_v10 = vpop.f32.mrf.mxu2 }
 0x140   :  { %v934_v12 = vadd.f32 %v775_v5, %v1410_v6  ;;  %v567_v15 = vadd.f32 %v566_v10, %v1502_v14  ;;  %813 = vmatmul.bf16.gmra.mxu1 %v676_v9 }
 0x141   :  { %v489_v16 = vpop.f32.mrf.mxu0 }
 0x142   :  { %998 = vst [vmem:[#allocation10] sm:$0xff] %v934_v12  ;;  %v653_v17 = vmax.f32 %v567_v15, 0.0  ;;  %v490_v19 = vadd.f32 %v489_v16, %v1502_v14  ;;  %v1191_v16 = vld [vmem:[#allocation2 + $0x110] sm:$0xff] }
 0x144   :  { %v692_v18 = vpack.c.bf16 %v653_v17, %v652_v7  ;;  %v622_v6 = vmax.f32 %v490_v19, 0.0 }
 0x145   :  { %v776_v4 = vpop.f32.mrf.mxu1 }
 0x146   :  { %v777_v20 = vadd.f32 %v776_v4, %v1645_v60  ;;  %893 = vmatmul.bf16.gmra.mxu3 %v692_v18 }
 0x147   :  { %v569_v21 = vpop.f32.mrf.mxu2 }
 0x148   :  { %v935_v22 = vadd.f32 %v777_v20, %v1415_v8  ;;  %v570_v35 = vadd.f32 %v569_v21, %v1502_v14 }
 0x149   :  { %v491_v25 = vpop.f32.mrf.mxu0  ;;  %v854_v28 = vpop.f32.mrf.mxu3 }
 0x14a   :  { %999 = vst [vmem:[#allocation10 + $0x8] sm:$0xff] %v935_v22  ;;  %v492_v11 = vadd.f32 %v491_v25, %v1502_v14  ;;  %v855_v30 = vadd.f32 %v854_v28, %v1645_v60  ;;  %v654_v46 = vmax.f32 %v570_v35, 0.0 }
 0x14c   :  { %v623_v31 = vmax.f32 %v492_v11, 0.0  ;;  %v966_v33 = vadd.f32 %v1188_v32, %v855_v30 }
 0x14d   :  { %v779_v34 = vpop.f32.mrf.mxu1 }
 0x14e   :  { %1030 = vst [vmem:[#allocation10 + $0x100] sm:$0xff] %v966_v33  ;;  %v780_v36 = vadd.f32 %v779_v34, %v1645_v60  ;;  %v677_v37 = vpack.c.bf16 %v623_v31, %v622_v6  ;;  %v1192_v31 = vld [vmem:[#allocation2 + $0x118] sm:$0xff] }
 0x14f   :  { %v571_v38 = vpop.f32.mrf.mxu2 }
 0x150   :  { %v936_v8 = vadd.f32 %v780_v36, %v1430_v29  ;;  %v572_v39 = vadd.f32 %v571_v38, %v1502_v14  ;;  %818 = vmatmul.bf16.gmra.mxu1 %v677_v37  ;;  %v1193_v37 = vld [vmem:[#allocation2 + $0x28] sm:$0xff] }
 0x151   :  { %v494_v40 = vpop.f32.mrf.mxu0  ;;  %v856_v43 = vpop.f32.mrf.mxu3 }
 0x152   :  { %1000 = vst [vmem:[#allocation10 + $0x10] sm:$0xff] %v936_v8  ;;  %v655_v50 = vmax.f32 %v572_v39, 0.0  ;;  %v857_v53 = vadd.f32 %v856_v43, %v1645_v60  ;;  %v495_v58 = vadd.f32 %v494_v40, %v1502_v14 }
 0x154   :  { %v967_v55 = vadd.f32 %v1189_v54, %v857_v53  ;;  %v693_v56 = vpack.c.bf16 %v655_v50, %v654_v46  ;;  %v624_v9 = vmax.f32 %v495_v58, 0.0  ;;  %v1194_v53 = vld [vmem:[#allocation2 + $0x120] sm:$0xff] }
 0x155   :  { %v781_v57 = vpop.f32.mrf.mxu1 }
 0x156   :  { %1031 = vst [vmem:[#allocation10 + $0x108] sm:$0xff] %v967_v55  ;;  %v782_v59 = vadd.f32 %v781_v57, %v1645_v60  ;;  %898 = vmatmul.bf16.gmra.mxu3 %v693_v56 }
 0x157   :  { %v574_v29 = vpop.f32.mrf.mxu2 }
 0x158   :  { %v937_v2 = vadd.f32 %v1190_v63, %v782_v59  ;;  %v575_v18 = vadd.f32 %v574_v29, %v1502_v14  ;;  %v1195_v29 = vld [vmem:[#allocation2 + $0x30] sm:$0xff] }
 0x159   :  { %v496_v3 = vpop.f32.mrf.mxu0  ;;  %v859_v5 = vpop.f32.mrf.mxu3 }
 0x15a   :  { %1001 = vst [vmem:[#allocation10 + $0x18] sm:$0xff] %v937_v2  ;;  %v497_v10 = vadd.f32 %v496_v3, %v1502_v14  ;;  %v860_v12 = vadd.f32 %v859_v5, %v1645_v60  ;;  %v656_v6 = vmax.f32 %v575_v18, 0.0 }
 0x15c   :  { %v625_v15 = vmax.f32 %v497_v10, 0.0  ;;  %v968_v7 = vadd.f32 %v1191_v16, %v860_v12 }
 0x15d   :  { %v784_v17 = vpop.f32.mrf.mxu1 }
 0x15e   :  { %1032 = vst [vmem:[#allocation10 + $0x110] sm:$0xff] %v968_v7  ;;  %v785_v4 = vadd.f32 %v784_v17, %v1645_v60  ;;  %v678_v19 = vpack.c.bf16 %v625_v15, %v624_v9  ;;  %v1196_v15 = vld [vmem:[#allocation2 + $0x128] sm:$0xff] }
 0x15f   :  { %v576_v20 = vpop.f32.mrf.mxu2 }
 0x160   :  { %v938_v21 = vadd.f32 %v785_v4, %v1441_v47  ;;  %v577_v22 = vadd.f32 %v576_v20, %v1502_v14  ;;  %823 = vmatmul.bf16.gmra.mxu1 %v678_v19  ;;  %v1197_v20 = vld [vmem:[#allocation2 + $0x38] sm:$0xff] }
 0x161   :  { %v499_v25 = vpop.f32.mrf.mxu0  ;;  %v861_v28 = vpop.f32.mrf.mxu3 }
 0x162   :  { %1002 = vst [vmem:[#allocation10 + $0x20] sm:$0xff] %v938_v21  ;;  %v657_v11 = vmax.f32 %v577_v22, 0.0  ;;  %v862_v30 = vadd.f32 %v861_v28, %v1645_v60  ;;  %v500_v35 = vadd.f32 %v499_v25, %v1502_v14 }
 0x164   :  { %v969_v32 = vadd.f32 %v1192_v31, %v862_v30  ;;  %v694_v33 = vpack.c.bf16 %v657_v11, %v656_v6  ;;  %v626_v40 = vmax.f32 %v500_v35, 0.0  ;;  %v1198_v31 = vld [vmem:[#allocation2 + $0x130] sm:$0xff] }
 0x165   :  { %v786_v34 = vpop.f32.mrf.mxu1 }
 0x166   :  { %1033 = vst [vmem:[#allocation10 + $0x118] sm:$0xff] %v969_v32  ;;  %v787_v36 = vadd.f32 %v786_v34, %v1645_v60  ;;  %903 = vmatmul.bf16.gmra.mxu3 %v694_v33 }
 0x167   :  { %v579_v47 = vpop.f32.mrf.mxu2 }
 0x168   :  { %v939_v38 = vadd.f32 %v1193_v37, %v787_v36  ;;  %v580_v56 = vadd.f32 %v579_v47, %v1502_v14  ;;  %v1199_v37 = vld [vmem:[#allocation2 + $0x40] sm:$0xff] }
 0x169   :  { %v501_v8 = vpop.f32.mrf.mxu0  ;;  %v864_v39 = vpop.f32.mrf.mxu3 }
 0x16a   :  { %1003 = vst [vmem:[#allocation10 + $0x28] sm:$0xff] %v939_v38  ;;  %v502_v43 = vadd.f32 %v501_v8, %v1502_v14  ;;  %v865_v46 = vadd.f32 %v864_v39, %v1645_v60  ;;  %v658_v9 = vmax.f32 %v580_v56, 0.0 }
 0x16c   :  { %v627_v50 = vmax.f32 %v502_v43, 0.0  ;;  %v970_v54 = vadd.f32 %v1194_v53, %v865_v46 }
 0x16d   :  { %v789_v55 = vpop.f32.mrf.mxu1 }
 0x16e   :  { %1034 = vst [vmem:[#allocation10 + $0x120] sm:$0xff] %v970_v54  ;;  %v790_v57 = vadd.f32 %v789_v55, %v1645_v60  ;;  %v679_v58 = vpack.c.bf16 %v627_v50, %v626_v40  ;;  %v1200_v54 = vld [vmem:[#allocation2 + $0x138] sm:$0xff] }
 0x16f   :  { %v581_v59 = vpop.f32.mrf.mxu2 }
 0x170   :  { %v940_v63 = vadd.f32 %v1195_v29, %v790_v57  ;;  %v582_v2 = vadd.f32 %v581_v59, %v1502_v14  ;;  %828 = vmatmul.bf16.gmra.mxu1 %v679_v58  ;;  %v1201_v29 = vld [vmem:[#allocation2 + $0x48] sm:$0xff] }
 0x171   :  { %v504_v3 = vpop.f32.mrf.mxu0  ;;  %v866_v5 = vpop.f32.mrf.mxu3 }
 0x172   :  { %1004 = vst [vmem:[#allocation10 + $0x30] sm:$0xff] %v940_v63  ;;  %v659_v10 = vmax.f32 %v582_v2, 0.0  ;;  %v867_v12 = vadd.f32 %v866_v5, %v1645_v60  ;;  %v505_v18 = vadd.f32 %v504_v3, %v1502_v14 }
 0x174   :  { %v971_v16 = vadd.f32 %v1196_v15, %v867_v12  ;;  %v695_v7 = vpack.c.bf16 %v659_v10, %v658_v9  ;;  %v628_v28 = vmax.f32 %v505_v18, 0.0  ;;  %v1202_v15 = vld [vmem:[#allocation2 + $0x140] sm:$0xff] }
 0x175   :  { %v791_v17 = vpop.f32.mrf.mxu1 }
 0x176   :  { %1035 = vst [vmem:[#allocation10 + $0x128] sm:$0xff] %v971_v16  ;;  %v792_v4 = vadd.f32 %v791_v17, %v1645_v60  ;;  %908 = vmatmul.bf16.gmra.mxu3 %v695_v7 }
 0x177   :  { %v584_v19 = vpop.f32.mrf.mxu2 }
 0x178   :  { %v941_v21 = vadd.f32 %v1197_v20, %v792_v4  ;;  %v585_v34 = vadd.f32 %v584_v19, %v1502_v14  ;;  %v1203_v20 = vld [vmem:[#allocation2 + $0x50] sm:$0xff] }
 0x179   :  { %v506_v22 = vpop.f32.mrf.mxu0  ;;  %v869_v25 = vpop.f32.mrf.mxu3 }
 0x17a   :  { %1005 = vst [vmem:[#allocation10 + $0x38] sm:$0xff] %v941_v21  ;;  %v507_v6 = vadd.f32 %v506_v22, %v1502_v14  ;;  %v870_v11 = vadd.f32 %v869_v25, %v1645_v60  ;;  %v660_v43 = vmax.f32 %v585_v34, 0.0 }
 0x17c   :  { %v629_v30 = vmax.f32 %v507_v6, 0.0  ;;  %v972_v32 = vadd.f32 %v1198_v31, %v870_v11 }
 0x17d   :  { %v794_v33 = vpop.f32.mrf.mxu1 }
 0x17e   :  { %v680_v35 = vpack.c.bf16 %v629_v30, %v628_v28  ;;  %1036 = vst [vmem:[#allocation10 + $0x130] sm:$0xff] %v972_v32  ;;  %v795_v36 = vadd.f32 %v794_v33, %v1645_v60  ;;  %v1204_v32 = vld [vmem:[#allocation2 + $0x148] sm:$0xff] }
 0x17f   :  { %v586_v47 = vpop.f32.mrf.mxu2 }
 0x180   :  { %v942_v38 = vadd.f32 %v1199_v37, %v795_v36  ;;  %v587_v8 = vadd.f32 %v586_v47, %v1502_v14  ;;  %833 = vmatmul.bf16.gmra.mxu1 %v680_v35  ;;  %v1205_v37 = vld [vmem:[#allocation2 + $0x58] sm:$0xff] }
 0x181   :  { %v509_v39 = vpop.f32.mrf.mxu0  ;;  %v871_v40 = vpop.f32.mrf.mxu3 }
 0x182   :  { %1006 = vst [vmem:[#allocation10 + $0x40] sm:$0xff] %v942_v38  ;;  %v661_v46 = vmax.f32 %v587_v8, 0.0  ;;  %v872_v50 = vadd.f32 %v871_v40, %v1645_v60  ;;  %v510_v57 = vadd.f32 %v509_v39, %v1502_v14 }
 0x184   :  { %v696_v53 = vpack.c.bf16 %v661_v46, %v660_v43  ;;  %v973_v55 = vadd.f32 %v1200_v54, %v872_v50  ;;  %v630_v5 = vmax.f32 %v510_v57, 0.0 }
 0x185   :  { %v796_v56 = vpop.f32.mrf.mxu1 }
 0x186   :  { %1037 = vst [vmem:[#allocation10 + $0x138] sm:$0xff] %v973_v55  ;;  %v797_v58 = vadd.f32 %v796_v56, %v1645_v60  ;;  %913 = vmatmul.bf16.gmra.mxu3 %v696_v53  ;;  %v1206_v53 = vld [vmem:[#allocation2 + $0x150] sm:$0xff] }
 0x187   :  { %v589_v59 = vpop.f32.mrf.mxu2 }
 0x188   :  { %v943_v63 = vadd.f32 %v1201_v29, %v797_v58  ;;  %v590_v17 = vadd.f32 %v589_v59, %v1502_v14  ;;  %v1207_v29 = vld [vmem:[#allocation2 + $0x60] sm:$0xff] }
 0x189   :  { %v511_v2 = vpop.f32.mrf.mxu0  ;;  %v874_v3 = vpop.f32.mrf.mxu3 }
 0x18a   :  { %1007 = vst [vmem:[#allocation10 + $0x48] sm:$0xff] %v943_v63  ;;  %v512_v9 = vadd.f32 %v511_v2, %v1502_v14  ;;  %v875_v10 = vadd.f32 %v874_v3, %v1645_v60  ;;  %v662_v6 = vmax.f32 %v590_v17, 0.0 }
 0x18c   :  { %v631_v12 = vmax.f32 %v512_v9, 0.0  ;;  %v974_v16 = vadd.f32 %v1202_v15, %v875_v10 }
 0x18d   :  { %v799_v7 = vpop.f32.mrf.mxu1 }
 0x18e   :  { %v681_v18 = vpack.c.bf16 %v631_v12, %v630_v5  ;;  %1038 = vst [vmem:[#allocation10 + $0x140] sm:$0xff] %v974_v16  ;;  %v800_v4 = vadd.f32 %v799_v7, %v1645_v60  ;;  %v1208_v16 = vld [vmem:[#allocation2 + $0x158] sm:$0xff] }
 0x18f   :  { %v591_v19 = vpop.f32.mrf.mxu2 }
 0x190   :  { %v944_v21 = vadd.f32 %v1203_v20, %v800_v4  ;;  %v592_v22 = vadd.f32 %v591_v19, %v1502_v14  ;;  %838 = vmatmul.bf16.gmra.mxu1 %v681_v18  ;;  %v1209_v20 = vld [vmem:[#allocation2 + $0x68] sm:$0xff] }
 0x191   :  { %v514_v25 = vpop.f32.mrf.mxu0  ;;  %v876_v28 = vpop.f32.mrf.mxu3 }
 0x192   :  { %1008 = vst [vmem:[#allocation10 + $0x50] sm:$0xff] %v944_v21  ;;  %v663_v11 = vmax.f32 %v592_v22, 0.0  ;;  %v877_v30 = vadd.f32 %v876_v28, %v1645_v60  ;;  %v515_v35 = vadd.f32 %v514_v25, %v1502_v14 }
 0x194   :  { %v697_v31 = vpack.c.bf16 %v663_v11, %v662_v6  ;;  %v975_v33 = vadd.f32 %v1204_v32, %v877_v30  ;;  %v632_v40 = vmax.f32 %v515_v35, 0.0 }
 0x195   :  { %v801_v34 = vpop.f32.mrf.mxu1 }
 0x196   :  { %1039 = vst [vmem:[#allocation10 + $0x148] sm:$0xff] %v975_v33  ;;  %v802_v36 = vadd.f32 %v801_v34, %v1645_v60  ;;  %918 = vmatmul.bf16.gmra.mxu3 %v697_v31  ;;  %v1210_v31 = vld [vmem:[#allocation2 + $0x160] sm:$0xff] }
 0x197   :  { %v594_v47 = vpop.f32.mrf.mxu2 }
 0x198   :  { %v945_v38 = vadd.f32 %v1205_v37, %v802_v36  ;;  %v595_v56 = vadd.f32 %v594_v47, %v1502_v14  ;;  %v1211_v37 = vld [vmem:[#allocation2 + $0x70] sm:$0xff] }
 0x199   :  { %v516_v8 = vpop.f32.mrf.mxu0  ;;  %v879_v39 = vpop.f32.mrf.mxu3 }
 0x19a   :  { %1009 = vst [vmem:[#allocation10 + $0x58] sm:$0xff] %v945_v38  ;;  %v517_v43 = vadd.f32 %v516_v8, %v1502_v14  ;;  %v880_v46 = vadd.f32 %v879_v39, %v1645_v60  ;;  %v664_v9 = vmax.f32 %v595_v56, 0.0 }
 0x19c   :  { %v633_v50 = vmax.f32 %v517_v43, 0.0  ;;  %v976_v54 = vadd.f32 %v1206_v53, %v880_v46  ;;  %v1212_v53 = vld [vmem:[#allocation2 + $0x168] sm:$0xff] }
 0x19d   :  { %v804_v55 = vpop.f32.mrf.mxu1 }
 0x19e   :  { %v682_v57 = vpack.c.bf16 %v633_v50, %v632_v40  ;;  %1040 = vst [vmem:[#allocation10 + $0x150] sm:$0xff] %v976_v54  ;;  %v805_v58 = vadd.f32 %v804_v55, %v1645_v60 }
 0x19f   :  { %v596_v59 = vpop.f32.mrf.mxu2 }
 0x1a0   :  { %v946_v63 = vadd.f32 %v1207_v29, %v805_v58  ;;  %v597_v2 = vadd.f32 %v596_v59, %v1502_v14  ;;  %843 = vmatmul.bf16.gmra.mxu1 %v682_v57  ;;  %v1213_v57 = vld [vmem:[#allocation2 + $0x78] sm:$0xff]  ;;  %v1214_v29 = vld [vmem:[#allocation2 + $0x170] sm:$0xff] }
 0x1a1   :  { %v519_v3 = vpop.f32.mrf.mxu0  ;;  %v881_v5 = vpop.f32.mrf.mxu3 }
 0x1a2   :  { %1010 = vst [vmem:[#allocation10 + $0x60] sm:$0xff] %v946_v63  ;;  %v665_v10 = vmax.f32 %v597_v2, 0.0  ;;  %v882_v12 = vadd.f32 %v881_v5, %v1645_v60  ;;  %v520_v18 = vadd.f32 %v519_v3, %v1502_v14  ;;  %v1215_v5 = vld [vmem:[#allocation2 + $0x80] sm:$0xff] }
 0x1a4   :  { %v698_v15 = vpack.c.bf16 %v665_v10, %v664_v9  ;;  %v977_v7 = vadd.f32 %v1208_v16, %v882_v12  ;;  %v634_v28 = vmax.f32 %v520_v18, 0.0  ;;  %v1217_v18 = vld [vmem:[#allocation2 + $0x88] sm:$0xff] }
 0x1a5   :  { %v806_v17 = vpop.f32.mrf.mxu1 }
 0x1a6   :  { %1041 = vst [vmem:[#allocation10 + $0x158] sm:$0xff] %v977_v7  ;;  %v807_v4 = vadd.f32 %v806_v17, %v1645_v60  ;;  %923 = vmatmul.bf16.gmra.mxu3 %v698_v15  ;;  %v1216_v15 = vld [vmem:[#allocation2 + $0x178] sm:$0xff] }
 0x1a7   :  { %v599_v19 = vpop.f32.mrf.mxu2 }
 0x1a8   :  { %v947_v21 = vadd.f32 %v1209_v20, %v807_v4  ;;  %v600_v34 = vadd.f32 %v599_v19, %v1502_v14 }
 0x1a9   :  { %v521_v22 = vpop.f32.mrf.mxu0  ;;  %v884_v25 = vpop.f32.mrf.mxu3 }
 0x1aa   :  { %1011 = vst [vmem:[#allocation10 + $0x68] sm:$0xff] %v947_v21  ;;  %v522_v6 = vadd.f32 %v521_v22, %v1502_v14  ;;  %v885_v11 = vadd.f32 %v884_v25, %v1645_v60  ;;  %v666_v40 = vmax.f32 %v600_v34, 0.0  ;;  %v1218_v21 = vld [vmem:[#allocation2 + $0x180] sm:$0xff] }
 0x1ac   :  { %v635_v30 = vmax.f32 %v522_v6, 0.0  ;;  %v978_v32 = vadd.f32 %v1210_v31, %v885_v11  ;;  %v1219_v6 = vld [vmem:[#allocation2 + $0x90] sm:$0xff] }
 0x1ad   :  { %v809_v33 = vpop.f32.mrf.mxu1 }
 0x1ae   :  { %v683_v35 = vpack.c.bf16 %v635_v30, %v634_v28  ;;  %1042 = vst [vmem:[#allocation10 + $0x160] sm:$0xff] %v978_v32  ;;  %v810_v36 = vadd.f32 %v809_v33, %v1645_v60  ;;  %v1220_v32 = vld [vmem:[#allocation2 + $0x188] sm:$0xff] }
 0x1af   :  { %v601_v47 = vpop.f32.mrf.mxu2 }
 0x1b0   :  { %v948_v38 = vadd.f32 %v1211_v37, %v810_v36  ;;  %v602_v8 = vadd.f32 %v601_v47, %v1502_v14  ;;  %848 = vmatmul.bf16.gmra.mxu1 %v683_v35  ;;  %v1221_v36 = vld [vmem:[#allocation2 + $0x98] sm:$0xff] }
 0x1b1   :  { %v886_v39 = vpop.f32.mrf.mxu3 }
 0x1b2   :  { %1012 = vst [vmem:[#allocation10 + $0x70] sm:$0xff] %v948_v38  ;;  %v667_v43 = vmax.f32 %v602_v8, 0.0  ;;  %v887_v46 = vadd.f32 %v886_v39, %v1645_v60  ;;  %v1222_v8 = vld [vmem:[#allocation2 + $0x190] sm:$0xff] }
 0x1b4   :  { %v699_v50 = vpack.c.bf16 %v667_v43, %v666_v40  ;;  %v979_v54 = vadd.f32 %v1212_v53, %v887_v46  ;;  %v1223_v46 = vld [vmem:[#allocation2 + $0xa0] sm:$0xff] }
 0x1b5   :  { %v811_v55 = vpop.f32.mrf.mxu1 }
 0x1b6   :  { %1043 = vst [vmem:[#allocation10 + $0x168] sm:$0xff] %v979_v54  ;;  %v812_v56 = vadd.f32 %v811_v55, %v1645_v60  ;;  %928 = vmatmul.bf16.gmra.mxu3 %v699_v50  ;;  %v1224_v55 = vld [vmem:[#allocation2 + $0x198] sm:$0xff] }
 0x1b8   :  { %v949_v58 = vadd.f32 %v1213_v57, %v812_v56 }
 0x1b9   :  { %v889_v59 = vpop.f32.mrf.mxu3 }
 0x1ba   :  { %1013 = vst [vmem:[#allocation10 + $0x78] sm:$0xff] %v949_v58  ;;  %v890_v14 = vadd.f32 %v889_v59, %v1645_v60  ;;  %v1225_v59 = vld [vmem:[#allocation2 + $0xa8] sm:$0xff] }
 0x1bc   :  { %v980_v63 = vadd.f32 %v1214_v29, %v890_v14 }
 0x1bd   :  { %v814_v2 = vpop.f32.mrf.mxu1 }
 0x1be   :  { %1044 = vst [vmem:[#allocation10 + $0x170] sm:$0xff] %v980_v63  ;;  %v815_v3 = vadd.f32 %v814_v2, %v1645_v60  ;;  %v1226_v2 = vld [vmem:[#allocation2 + $0x1a0] sm:$0xff] }
 0x1c0   :  { %v950_v9 = vadd.f32 %v1215_v5, %v815_v3 }
 0x1c1   :  { %v891_v10 = vpop.f32.mrf.mxu3 }
 0x1c2   :  { %1014 = vst [vmem:[#allocation10 + $0x80] sm:$0xff] %v950_v9  ;;  %v892_v12 = vadd.f32 %v891_v10, %v1645_v60 }
 0x1c4   :  { %v981_v16 = vadd.f32 %v1216_v15, %v892_v12 }
 0x1c5   :  { %v816_v7 = vpop.f32.mrf.mxu1 }
 0x1c6   :  { %1045 = vst [vmem:[#allocation10 + $0x178] sm:$0xff] %v981_v16  ;;  %v817_v17 = vadd.f32 %v816_v7, %v1645_v60  ;;  %v1227_v16 = vld [vmem:[#allocation2 + $0x1a8] sm:$0xff] }
 0x1c8   :  { %v951_v4 = vadd.f32 %v1217_v18, %v817_v17 }
 0x1c9   :  { %v894_v19 = vpop.f32.mrf.mxu3 }
 0x1ca   :  { %1015 = vst [vmem:[#allocation10 + $0x88] sm:$0xff] %v951_v4  ;;  %v895_v20 = vadd.f32 %v894_v19, %v1645_v60  ;;  %v1228_v4 = vld [vmem:[#allocation2 + $0xb8] sm:$0xff] }
 0x1cc   :  { %v982_v22 = vadd.f32 %v1218_v21, %v895_v20 }
 0x1cd   :  { %v819_v25 = vpop.f32.mrf.mxu1 }
 0x1ce   :  { %1046 = vst [vmem:[#allocation10 + $0x180] sm:$0xff] %v982_v22  ;;  %v820_v28 = vadd.f32 %v819_v25, %v1645_v60  ;;  %v1229_v22 = vld [vmem:[#allocation2 + $0x1b0] sm:$0xff] }
 0x1d0   :  { %v952_v11 = vadd.f32 %v1219_v6, %v820_v28 }
 0x1d1   :  { %v896_v30 = vpop.f32.mrf.mxu3 }
 0x1d2   :  { %1016 = vst [vmem:[#allocation10 + $0x90] sm:$0xff] %v952_v11  ;;  %v897_v31 = vadd.f32 %v896_v30, %v1645_v60 }
 0x1d4   :  { %v983_v33 = vadd.f32 %v1220_v32, %v897_v31  ;;  %v1230_v31 = vld [vmem:[#allocation2 + $0x1b8] sm:$0xff] }
 0x1d5   :  { %v821_v34 = vpop.f32.mrf.mxu1 }
 0x1d6   :  { %1047 = vst [vmem:[#allocation10 + $0x188] sm:$0xff] %v983_v33  ;;  %v822_v35 = vadd.f32 %v821_v34, %v1645_v60 }
 0x1d8   :  { %v953_v47 = vadd.f32 %v1221_v36, %v822_v35 }
 0x1d9   :  { %v899_v37 = vpop.f32.mrf.mxu3 }
 0x1da   :  { %1017 = vst [vmem:[#allocation10 + $0x98] sm:$0xff] %v953_v47  ;;  %v900_v38 = vadd.f32 %v899_v37, %v1645_v60 }
 0x1dc   :  { %v984_v39 = vadd.f32 %v1222_v8, %v900_v38 }
 0x1dd   :  { %v824_v40 = vpop.f32.mrf.mxu1 }
 0x1de   :  { %1048 = vst [vmem:[#allocation10 + $0x190] sm:$0xff] %v984_v39  ;;  %v825_v43 = vadd.f32 %v824_v40, %v1645_v60 }
 0x1e0   :  { %v954_v50 = vadd.f32 %v1223_v46, %v825_v43 }
 0x1e1   :  { %v901_v53 = vpop.f32.mrf.mxu3 }
 0x1e2   :  { %1018 = vst [vmem:[#allocation10 + $0xa0] sm:$0xff] %v954_v50  ;;  %v902_v54 = vadd.f32 %v901_v53, %v1645_v60 }
 0x1e4   :  { %v985_v56 = vadd.f32 %v1224_v55, %v902_v54 }
 0x1e5   :  { %v826_v57 = vpop.f32.mrf.mxu1 }
 0x1e6   :  { %1049 = vst [vmem:[#allocation10 + $0x198] sm:$0xff] %v985_v56  ;;  %v827_v58 = vadd.f32 %v826_v57, %v1645_v60 }
 0x1e8   :  { %v955_v14 = vadd.f32 %v1225_v59, %v827_v58 }
 0x1e9   :  { %v904_v29 = vpop.f32.mrf.mxu3 }
 0x1ea   :  { %1019 = vst [vmem:[#allocation10 + $0xa8] sm:$0xff] %v955_v14  ;;  %v905_v63 = vadd.f32 %v904_v29, %v1645_v60 }
 0x1ec   :  { %v986_v3 = vadd.f32 %v1226_v2, %v905_v63 }
 0x1ed   :  { %v829_v5 = vpop.f32.mrf.mxu1 }
 0x1ee   :  { %1050 = vst [vmem:[#allocation10 + $0x1a0] sm:$0xff] %v986_v3  ;;  %v830_v9 = vadd.f32 %v829_v5, %v1645_v60 }
 0x1f0   :  { %v956_v10 = vadd.f32 %v830_v9, %v1527_v13 }
 0x1f1   :  { %v906_v12 = vpop.f32.mrf.mxu3 }
 0x1f2   :  { %1020 = vst [vmem:[#allocation10 + $0xb0] sm:$0xff] %v956_v10  ;;  %v907_v15 = vadd.f32 %v906_v12, %v1645_v60 }
 0x1f4   :  { %v987_v7 = vadd.f32 %v1227_v16, %v907_v15 }
 0x1f5   :  { %v831_v17 = vpop.f32.mrf.mxu1 }
 0x1f6   :  { %1051 = vst [vmem:[#allocation10 + $0x1a8] sm:$0xff] %v987_v7  ;;  %v832_v18 = vadd.f32 %v831_v17, %v1645_v60 }
 0x1f8   :  { %v957_v19 = vadd.f32 %v1228_v4, %v832_v18 }
 0x1f9   :  { %v909_v20 = vpop.f32.mrf.mxu3 }
 0x1fa   :  { %1021 = vst [vmem:[#allocation10 + $0xb8] sm:$0xff] %v957_v19  ;;  %v910_v21 = vadd.f32 %v909_v20, %v1645_v60 }
 0x1fc   :  { %v988_v25 = vadd.f32 %v1229_v22, %v910_v21 }
 0x1fd   :  { %v834_v28 = vpop.f32.mrf.mxu1 }
 0x1fe   :  { %1052 = vst [vmem:[#allocation10 + $0x1b0] sm:$0xff] %v988_v25  ;;  %v835_v13 = vadd.f32 %v834_v28, %v1645_v60 }
 0x200   :  { %v958_v6 = vadd.f32 %v835_v13, %v1542_v48 }
 0x201   :  { %v911_v11 = vpop.f32.mrf.mxu3 }
 0x202   :  { %1022 = vst [vmem:[#allocation10 + $0xc0] sm:$0xff] %v958_v6  ;;  %v912_v30 = vadd.f32 %v911_v11, %v1645_v60 }
 0x204   :  { %v989_v32 = vadd.f32 %v1230_v31, %v912_v30 }
 0x205   :  { %v836_v33 = vpop.f32.mrf.mxu1 }
 0x206   :  { %1053 = vst [vmem:[#allocation10 + $0x1b8] sm:$0xff] %v989_v32  ;;  %v837_v34 = vadd.f32 %v836_v33, %v1645_v60 }
 0x208   :  { %v959_v35 = vadd.f32 %v837_v34, %v1544_v49 }
 0x209   :  { %v914_v36 = vpop.f32.mrf.mxu3 }
 0x20a   :  { %1023 = vst [vmem:[#allocation10 + $0xc8] sm:$0xff] %v959_v35  ;;  %v915_v47 = vadd.f32 %v914_v36, %v1645_v60 }
 0x20c   :  { %v990_v37 = vadd.f32 %v915_v47, %v1546_v51 }
 0x20d   :  { %v839_v38 = vpop.f32.mrf.mxu1 }
 0x20e   :  { %1054 = vst [vmem:[#allocation10 + $0x1c0] sm:$0xff] %v990_v37  ;;  %v840_v48 = vadd.f32 %v839_v38, %v1645_v60 }
 0x210   :  { %v960_v8 = vadd.f32 %v840_v48, %v1566_v23 }
 0x211   :  { %v916_v39 = vpop.f32.mrf.mxu3 }
 0x212   :  { %1024 = vst [vmem:[#allocation10 + $0xd0] sm:$0xff] %v960_v8  ;;  %v917_v40 = vadd.f32 %v916_v39, %v1645_v60 }
 0x214   :  { %v991_v43 = vadd.f32 %v917_v40, %v1548_v52 }
 0x215   :  { %v841_v46 = vpop.f32.mrf.mxu1 }
 0x216   :  { %1055 = vst [vmem:[#allocation10 + $0x1c8] sm:$0xff] %v991_v43  ;;  %v842_v49 = vadd.f32 %v841_v46, %v1645_v60 }
 0x218   :  { %v961_v50 = vadd.f32 %v842_v49, %v1568_v24 }
 0x219   :  { %v919_v53 = vpop.f32.mrf.mxu3 }
 0x21a   :  { %1025 = vst [vmem:[#allocation10 + $0xd8] sm:$0xff] %v961_v50  ;;  %v920_v51 = vadd.f32 %v919_v53, %v1645_v60 }
 0x21c   :  { %v992_v54 = vadd.f32 %v920_v51, %v1570_v26 }
 0x21d   :  { %v844_v55 = vpop.f32.mrf.mxu1 }
 0x21e   :  { %1056 = vst [vmem:[#allocation10 + $0x1d0] sm:$0xff] %v992_v54  ;;  %v845_v23 = vadd.f32 %v844_v55, %v1645_v60 }
 0x220   :  { %v962_v56 = vadd.f32 %v845_v23, %v1590_v61 }
 0x221   :  { %v921_v57 = vpop.f32.mrf.mxu3 }
 0x222   :  { %1026 = vst [vmem:[#allocation10 + $0xe0] sm:$0xff] %v962_v56  ;;  %v922_v52 = vadd.f32 %v921_v57, %v1645_v60 }
 0x224   :  { %v993_v58 = vadd.f32 %v922_v52, %v1572_v27 }
 0x225   :  { %v846_v59 = vpop.f32.mrf.mxu1 }
 0x226   :  { %1057 = vst [vmem:[#allocation10 + $0x1d8] sm:$0xff] %v993_v58  ;;  %v847_v24 = vadd.f32 %v846_v59, %v1645_v60 }
 0x228   :  { %v963_v14 = vadd.f32 %v847_v24, %v1592_v62 }
 0x229   :  { %v924_v29 = vpop.f32.mrf.mxu3 }
 0x22a   :  { %1027 = vst [vmem:[#allocation10 + $0xe8] sm:$0xff] %v963_v14  ;;  %v925_v26 = vadd.f32 %v924_v29, %v1645_v60 }
 0x22c   :  { %v994_v63 = vadd.f32 %v925_v26, %v1594_v0 }
 0x22d   :  { %v849_v2 = vpop.f32.mrf.mxu1 }
 0x22e   :  { %1058 = vst [vmem:[#allocation10 + $0x1e0] sm:$0xff] %v994_v63  ;;  %v850_v61 = vadd.f32 %v849_v2, %v1645_v60 }
 0x230   :  { %v964_v3 = vadd.f32 %v850_v61, %v1614_v41 }
 0x231   :  { %v926_v5 = vpop.f32.mrf.mxu3 }
 0x232   :  { %1028 = vst [vmem:[#allocation10 + $0xf0] sm:$0xff] %v964_v3  ;;  %v927_v27 = vadd.f32 %v926_v5, %v1645_v60 }
 0x234   :  { %v995_v9 = vadd.f32 %v927_v27, %v1596_v1 }
 0x235   :  { %v851_v10 = vpop.f32.mrf.mxu1 }
 0x236   :  { %1059 = vst [vmem:[#allocation10 + $0x1e8] sm:$0xff] %v995_v9  ;;  %v852_v62 = vadd.f32 %v851_v10, %v1645_v60 }
 0x238   :  { %v965_v12 = vadd.f32 %v852_v62, %v1616_v42 }
 0x239   :  { %v929_v15 = vpop.f32.mrf.mxu3 }
 0x23a   :  { %1029 = vst [vmem:[#allocation10 + $0xf8] sm:$0xff] %v965_v12  ;;  %v930_v0 = vadd.f32 %v929_v15, %v1645_v60 }
 0x23c   :  { %v996_v16 = vadd.f32 %v930_v0, %v1618_v44 }
 0x23e   :  { %1060 = vst [vmem:[#allocation10 + $0x1f0] sm:$0xff] %v996_v16 }
 0x241   :  { %v931_v41 = vpop.f32.mrf.mxu3 }
 0x242   :  { %v932_v1 = vadd.f32 %v931_v41, %v1645_v60 }
 0x244   :  { %v997_v7 = vadd.f32 %v932_v1, %v1620_v45 }
 0x246   :  { %1061 = vst [vmem:[#allocation10 + $0x1f8] sm:$0xff] %v997_v7 }
 0x247   :  { %1074 = dma.vmem_to_hbm [thread:$0]  %s1067_s3, 8192, %s1069_s13, [#allocation4], %s1361_s25, %s1361_s25, %s1362_s26  }
 0x248   :  { %1357 = dma.done.wait [#allocation4], 8192  }
 0x249   :  { %1358 = vsyncadd [#allocation4], 4294959104 }
 0x24a   :  { %1079 = vsyncpa [#allocation3], 1 }
 0x24b   :  { %1080 = vsyncpa [#allocation6], 1 }
 0x24c   :  { %1081 = vsyncpa [#allocation9], 1 }
 0x24d   :  { %1082 = vsyncpa [#allocation4], 1 }

</bundles_post_ra>
